<compile_context>
chip_gen: v6e
topology: v6e:2x2x1
jax: 0.10.0
libtpu: 0.0.40
codegen_flags: <defaults>
</compile_context>

<pallas_src>
import functools

import jax
import jax.numpy as jnp
from jax.experimental import pallas as pl
from jax.experimental.pallas import tpu as pltpu


def _round_up(x: int, m: int) -> int:
    return ((x + m - 1) // m) * m


def _rgcn_kernel(h_ref, node_ref, w_ref, b_ref, o_ref):
    # h_ref:    (tile_n, in_feat)  bf16 -- matmul LHS (self-loop message)
    # node_ref: (tile_n, tile_f)   f32  -- post-propagate features (identity)
    # w_ref:    (in_feat, tile_f)  bf16 -- self-loop weight tile
    # b_ref:    (1, tile_f)        f32  -- bias tile
    # o_ref:    (tile_n, tile_f)
    loop_message = jnp.dot(
        h_ref[...], w_ref[...], preferred_element_type=jnp.float32
    )
    # Fused elementwise tail: propagate(h) + bias + loop_message, then ReLU.
    o_ref[...] = jnp.maximum(
        loop_message + node_ref[...] + b_ref[...], 0.0
    ).astype(o_ref.dtype)


@functools.partial(
    jax.jit, static_argnames=("tile_n", "tile_f", "compute_dtype")
)
def rgcn_layer_forward(h, loop_weight, bias, *, tile_n=256, tile_f=256,
                       compute_dtype=jnp.bfloat16):
    """Pallas RGCNLayer forward. h: [N, in_feat] -> [N, out_feat]."""
    n, in_feat = h.shape
    in_feat_w, out_feat = loop_weight.shape
    assert in_feat == in_feat_w, "loop_weight must be [in_feat, out_feat]"
    # Identity-propagate assumption (see TODO above).
    assert in_feat == out_feat, "identity propagate() requires in_feat == out_feat"

    # Tile sizing: sublane multiple 16 for bf16 (8 for f32), lane multiple 128.
    sub = 16 if jnp.dtype(compute_dtype).itemsize == 2 else 8
    tile_n = _round_up(max(sub, min(tile_n, _round_up(n, sub))), sub)
    tile_f = _round_up(max(128, min(tile_f, _round_up(out_feat, 128))), 128)

    n_p = _round_up(n, tile_n)
    f_p = _round_up(out_feat, tile_f)

    # Zero-pad to the tile grid (padded rows/cols are sliced off at the end).
    h_mm = jnp.pad(h, ((0, n_p - n), (0, 0))).astype(compute_dtype)
    node = jnp.pad(h.astype(jnp.float32), ((0, n_p - n), (0, f_p - out_feat)))
    w_mm = jnp.pad(loop_weight,
                   ((0, 0), (0, f_p - out_feat))).astype(compute_dtype)
    b2d = jnp.pad(bias.astype(jnp.float32), (0, f_p - out_feat)).reshape(1, f_p)

    grid = (n_p // tile_n, f_p // tile_f)

    # Explicit VMEM budget for the chosen tiles (x2 for double buffering).
    cbytes = jnp.dtype(compute_dtype).itemsize
    tile_bytes = (
        tile_n * in_feat * cbytes          # h tile (bf16)
        + tile_n * tile_f * 4              # node tile (f32)
        + in_feat * tile_f * cbytes        # weight tile (bf16)
        + tile_f * 4                       # bias tile (f32)
        + tile_n * tile_f * h.dtype.itemsize  # output tile
    )
    vmem_limit = int(min(64 * 1024 * 1024,
                         max(16 * 1024 * 1024, 2 * tile_bytes + (2 << 20))))

    out_p = pl.pallas_call(
        _rgcn_kernel,
        out_shape=jax.ShapeDtypeStruct((n_p, f_p), h.dtype),
        grid_spec=pltpu.PrefetchScalarGridSpec(
            num_scalar_prefetch=0,
            grid=grid,
            in_specs=[
                pl.BlockSpec((tile_n, in_feat), lambda i, j: (i, 0)),
                pl.BlockSpec((tile_n, tile_f), lambda i, j: (i, j)),
                pl.BlockSpec((in_feat, tile_f), lambda i, j: (0, j)),
                pl.BlockSpec((1, tile_f), lambda i, j: (0, j)),
            ],
            out_specs=pl.BlockSpec((tile_n, tile_f), lambda i, j: (i, j)),
        ),
        compiler_params=pltpu.CompilerParams(
            dimension_semantics=("parallel", "parallel"),
            vmem_limit_bytes=vmem_limit,
        ),
    )(h_mm, node, w_mm, b2d)

    return out_p[:n, :out_feat]


def _xavier_uniform(key, shape, gain):
    fan_in, fan_out = shape[0], shape[1]
    bound = gain * (6.0 / (fan_in + fan_out)) ** 0.5
    return jax.random.uniform(key, shape, jnp.float32, minval=-bound, maxval=bound)


if __name__ == "__main__":
    # Small deterministic setup: N=300 nodes (exercises row padding),
    # in_feat = out_feat = 384 (exercises out_feat tiling + column padding).
    N, IN_FEAT, OUT_FEAT = 300, 384, 384
    gain = 2.0 ** 0.5  # nn.init.calculate_gain('relu')

    key = jax.random.PRNGKey(0)
    k_h, k_w, k_b = jax.random.split(key, 3)

    h = jax.random.normal(k_h, (N, IN_FEAT), jnp.float32)
    loop_weight = _xavier_uniform(k_w, (IN_FEAT, OUT_FEAT), gain)
    bias = jax.random.uniform(
        k_b, (OUT_FEAT,), jnp.float32, minval=-0.1, maxval=0.1
    )

    out = rgcn_layer_forward(h, loop_weight, bias, tile_n=256, tile_f=256)
    jax.block_until_ready(out)

    # Pure-JAX reference (same bf16 matmul operands, f32 accumulate / residual).
    lm = jnp.dot(h.astype(jnp.bfloat16), loop_weight.astype(jnp.bfloat16),
                 preferred_element_type=jnp.float32)
    ref = jnp.maximum(h + bias[None, :] + lm, 0.0)

    assert out.shape == (N, OUT_FEAT)
    assert jnp.allclose(out, ref, atol=2e-3, rtol=2e-3), float(
        jnp.max(jnp.abs(out - ref)))

    print("KERNEL_OK")
</pallas_src>

<mosaic_0001>
module attributes {stable_mosaic.version = 11 : i64} {
  func.func @_rgcn_kernel(%arg0: i32, %arg1: i32, %arg2: memref<256x384xbf16, #tpu.memory_space<vmem>>, %arg3: memref<256x256xf32, #tpu.memory_space<vmem>>, %arg4: memref<384x256xbf16, #tpu.memory_space<vmem>>, %arg5: memref<1x256xf32, #tpu.memory_space<vmem>>, %arg6: memref<256x256xf32, #tpu.memory_space<vmem>>) attributes {dimension_semantics = [#tpu.dimension_semantics<parallel>, #tpu.dimension_semantics<parallel>], iteration_bounds = array<i64: 2, 2>, scalar_prefetch = 0 : i64, scratch_operands = 0 : i64, tpu.core_type = #tpu.core_type<tc>, window_params = [{transform_indices = @transform_0, window_bounds = array<i64: 256, 384>}, {transform_indices = @transform_1, window_bounds = array<i64: 256, 256>}, {transform_indices = @transform_2, window_bounds = array<i64: 384, 256>}, {transform_indices = @transform_3, window_bounds = array<i64: 1, 256>}, {transform_indices = @transform_4, window_bounds = array<i64: 256, 256>}]} {
    %c0 = arith.constant 0 : index
    %c0_0 = arith.constant 0 : index
    %0 = vector.load %arg2[%c0, %c0_0] : memref<256x384xbf16, #tpu.memory_space<vmem>>, vector<256x384xbf16>
    %c0_1 = arith.constant 0 : index
    %c0_2 = arith.constant 0 : index
    %1 = vector.load %arg4[%c0_1, %c0_2] : memref<384x256xbf16, #tpu.memory_space<vmem>>, vector<384x256xbf16>
    %cst = arith.constant dense<0.000000e+00> : vector<256x256xf32>
    %2 = tpu.matmul %0, %1, %cst {dimension_numbers = #tpu.dot_dimension_numbers<[1], [0], [0], [1], [0, 0, 1, 1], [], []>} : vector<256x384xbf16>, vector<384x256xbf16>, vector<256x256xf32> -> vector<256x256xf32>
    %c0_3 = arith.constant 0 : index
    %c0_4 = arith.constant 0 : index
    %3 = vector.load %arg3[%c0_3, %c0_4] : memref<256x256xf32, #tpu.memory_space<vmem>>, vector<256x256xf32>
    %4 = arith.addf %2, %3 : vector<256x256xf32>
    %c0_5 = arith.constant 0 : index
    %c0_6 = arith.constant 0 : index
    %5 = vector.load %arg5[%c0_5, %c0_6] : memref<1x256xf32, #tpu.memory_space<vmem>>, vector<1x256xf32>
    %6 = vector.broadcast %5 : vector<1x256xf32> to vector<256x256xf32>
    %7 = arith.addf %4, %6 : vector<256x256xf32>
    %cst_7 = arith.constant 0.000000e+00 : f32
    %8 = vector.broadcast %cst_7 : f32 to vector<256x256xf32>
    %9 = arith.maximumf %7, %8 : vector<256x256xf32>
    %c0_8 = arith.constant 0 : index
    %c0_9 = arith.constant 0 : index
    %10 = vector.load %arg6[%c0_8, %c0_9] : memref<256x256xf32, #tpu.memory_space<vmem>>, vector<256x256xf32>
    tpu.vector_store %arg6[%c0_8, %c0_9], %9 {strides = array<i32>} : memref<256x256xf32, #tpu.memory_space<vmem>>, vector<256x256xf32>,
    return
  }
  func.func @transform_0(%arg0: i32, %arg1: i32) -> (i32, i32) {
    %c0_i32 = arith.constant 0 : i32
    %c0_i32_0 = arith.constant 0 : i32
    return %arg0, %c0_i32 : i32, i32
  }
  func.func @transform_1(%arg0: i32, %arg1: i32) -> (i32, i32) {
    %c0_i32 = arith.constant 0 : i32
    return %arg0, %arg1 : i32, i32
  }
  func.func @transform_2(%arg0: i32, %arg1: i32) -> (i32, i32) {
    %c0_i32 = arith.constant 0 : i32
    %c0_i32_0 = arith.constant 0 : i32
    return %c0_i32, %arg1 : i32, i32
  }
  func.func @transform_3(%arg0: i32, %arg1: i32) -> (i32, i32) {
    %c0_i32 = arith.constant 0 : i32
    %c0_i32_0 = arith.constant 0 : i32
    return %c0_i32, %arg1 : i32, i32
  }
  func.func @transform_4(%arg0: i32, %arg1: i32) -> (i32, i32) {
    %c0_i32 = arith.constant 0 : i32
    return %arg0, %arg1 : i32, i32
  }
}

</mosaic_0001>

<bundles_post_ra>
// kernel: rgcn_layer_forward.1
= control target key start
LH: loop header
LB: loop body
LE: loop exit
PB: predicated region body
PF: predicated region fallthrough
CT: control target
= control target key end

     0   :  { %s2615_s15 = smov 0   ;;  %s2617_s16 = smov 0   ;;  %s3601_s0 = inlined_call_operand.vmem [shape: bf16[512,384], index: 0, kind: input, shape index: {}]   ;;  %s3602_s1 = inlined_call_operand.vmem [shape: f32[512,512], index: 1, kind: input, shape index: {}]   ;;  %s3603_s2 = inlined_call_operand.vmem [shape: bf16[384,512], index: 2, kind: input, shape index: {}]   ;;  %s3604_s3 = inlined_call_operand.vmem [shape: f32[1,512], index: 3, kind: input, shape index: {}]   ;;  %s3605_s4 = inlined_call_operand.vmem [shape: f32[512,512], index: 4, kind: output, shape index: {}]  }
   0x1   :  { %s2619_s17 = smov 0   ;;  %s2621_s18 = smov 0  }
   0x2   :  { %s2623_s19 = smov 0   ;;  %s2625_s20 = smov 0  }
   0x3   :  { %s2627_s21 = smov 0   ;;  %s2629_s22 = smov 0  }
   0x4   :  { %s2631_s23 = smov 0  }
   0x5 LB: > { %s2182_s24 = sadd.s32 4294967295, %s2587_s23   ;;  %s23_s25 = sadd.s32 1, %s2579_s21  ;;  %s2587_s23 = sphi %s2631_s23, %s14_s23   ;;  %s2583_s22 = sphi %s2629_s22, %s3616_s22   ;;  %s2579_s21 = sphi %s2627_s21, %s3615_s21   ;;  %s2575_s20 = sphi %s2625_s20, %s3614_s20   ;;  %s2571_s19 = sphi %s2623_s19, %s3613_s19   ;;  %s2567_s18 = sphi %s2621_s18, %s3612_s18   ;;  %s2563_s17 = sphi %s2619_s17, %s3611_s17   ;;  %s2559_s16 = sphi %s2617_s16, %s3610_s16   ;;  %s2555_s15 = sphi %s2615_s15, %s3609_s15  }
   0x6   : > { %p24_p0 = scmp.ge.s32.totalorder %s23_s25, 2  ;;  %s26_s26 = sadd.s32 1, %s2583_s22 }
   0x7   : > { %s61_s27 = sadd.s32 1, %s2567_s18  ;;  %p68_p1 = scmp.ne.s32.totalorder %s2567_s18, %s2563_s17 }
   0x8   : > { %s3618_s25 = smov (%p24_p0, %s23_s25), 0  ;;  %s3620_s26 = smov (!%p24_p0, %s26_s26), %s2583_s22 }
   0x9   : > { %s57_s28 = ssub.s32 %s2579_s21, %s3618_s25  ;;  %p69_p2 = scmp.eq.s32.totalorder %s2587_s23, 0 }
   0xa   : > { %p28_p3 = scmp.ge.s32.totalorder %s3620_s26, 2  ;;  %p85_p4 = scmp.eq.s32.totalorder %s57_s28, 0 }
   0xb   : > { %p2675_p5 = por %p69_p2, %p68_p1  ;;  %s87_s30 = sadd.s32 1, %s2559_s16 }
   0xc   : > { %s3622_s26 = smov (%p28_p3, %s3620_s26), 0  ;;  %p94_p6 = scmp.ne.s32.totalorder %s2559_s16, %s2555_s15 }
   0xd   : > { %s2683_s5 = scalar_select %p85_p4, %s2559_s16, %s87_s30  }
   0xe   : > { %s56_s6 = ssub.s32 %s2583_s22, %s3622_s26  ;;  %p152_p7 = scmp.eq.s32.totalorder %s2182_s24, 3 }
   0xf   : > { %s58_s7 = sor.u32 %s57_s28, %s56_s6  ;;  %p2689_p9 = por %p94_p6, %p69_p2 }
  0x10   : > { %p59_p8 = scmp.eq.s32.totalorder %s58_s7, 0  ;;  %p2696_p10 = por %p152_p7, %p68_p1 }
  0x11   : > { %p2185_p11 = scmp.ge.s32.totalorder %s2587_s23, 4 }
  0x12   : > { %s2701_s10 = scalar_select %p59_p8, %s2567_s18, %s61_s27  }
  0x13   : > { %174 = sbr.rel (%p2185_p11) target bundleno = 91 (0x5b), region = 16 }
  0x18   : > { %187 = sbr.rel (!%p2675_p5) target bundleno = 63 (0x3f), region = 24  ;;  %s189_s11 = sand.u32 (%p2675_p5), 1, %s2567_s18  }
  0x19   : > { %s2188_s12 = sshll.u32 (%p2675_p5), %s2579_s21, 1  ;;  %s2186_s13 = sshll.u32 (%p2675_p5), %s189_s11, 9 }
  0x1a   : > { %s2302_s14 = sshll.u32 (%p2675_p5), %s2583_s22, 7  ;;  %s2717_s29 = scalar_lea.vmem (%p2675_p5), [#allocation2], %s2186_s13 }
  0x1b   : > { %s195_s24 = sadd.s32 (%p2675_p5), %s2302_s14, %s2188_s12 }
  0x1c   : > { %s2190_s28 = sshll.u32 (%p2675_p5), %s195_s24, 3 }
  0x1d   : > { %s2712_s27 = scalar_lea.vmem %s3602_s1, %s2190_s28 }
  0x1e   : > { %v210_v0 = vld [vmem:[%s2712_s27] sm:$0xff]  ;;  %v212_v1 = vld [vmem:[%s2712_s27 + $0x8] sm:$0xff] }
  0x1f   : > { %v214_v2 = vld [vmem:[%s2712_s27 + $0x20] sm:$0xff]  ;;  %211 = vst [vmem:[%s2717_s29] sm:$0xff] %v210_v0  ;;  %213 = vst [vmem:[%s2717_s29 + $0x8] sm:$0xff] %v212_v1  ;;  %v216_v3 = vld [vmem:[%s2712_s27 + $0x28] sm:$0xff] }
  0x20   : > { %215 = vst [vmem:[%s2717_s29 + $0x10] sm:$0xff] %v214_v2  ;;  %v218_v4 = vld [vmem:[%s2712_s27 + $0x40] sm:$0xff]  ;;  %v220_v5 = vld [vmem:[%s2712_s27 + $0x48] sm:$0xff]  ;;  %217 = vst [vmem:[%s2717_s29 + $0x18] sm:$0xff] %v216_v3 }
  0x21   : > { %219 = vst [vmem:[%s2717_s29 + $0x20] sm:$0xff] %v218_v4  ;;  %221 = vst [vmem:[%s2717_s29 + $0x28] sm:$0xff] %v220_v5  ;;  %v222_v6 = vld [vmem:[%s2712_s27 + $0x60] sm:$0xff]  ;;  %v224_v7 = vld [vmem:[%s2712_s27 + $0x68] sm:$0xff] }
  0x22   : > { %v226_v8 = vld [vmem:[%s2712_s27 + $0x80] sm:$0xff]  ;;  %223 = vst [vmem:[%s2717_s29 + $0x30] sm:$0xff] %v222_v6  ;;  %225 = vst [vmem:[%s2717_s29 + $0x38] sm:$0xff] %v224_v7  ;;  %v228_v9 = vld [vmem:[%s2712_s27 + $0x88] sm:$0xff] }
  0x23   : > { %227 = vst [vmem:[%s2717_s29 + $0x40] sm:$0xff] %v226_v8  ;;  %v230_v10 = vld [vmem:[%s2712_s27 + $0xa0] sm:$0xff]  ;;  %v232_v11 = vld [vmem:[%s2712_s27 + $0xa8] sm:$0xff]  ;;  %229 = vst [vmem:[%s2717_s29 + $0x48] sm:$0xff] %v228_v9 }
  0x24   : > { %231 = vst [vmem:[%s2717_s29 + $0x50] sm:$0xff] %v230_v10  ;;  %233 = vst [vmem:[%s2717_s29 + $0x58] sm:$0xff] %v232_v11  ;;  %v234_v12 = vld [vmem:[%s2712_s27 + $0xc0] sm:$0xff]  ;;  %v236_v13 = vld [vmem:[%s2712_s27 + $0xc8] sm:$0xff] }
  0x25   : > { %v238_v14 = vld [vmem:[%s2712_s27 + $0xe0] sm:$0xff]  ;;  %235 = vst [vmem:[%s2717_s29 + $0x60] sm:$0xff] %v234_v12  ;;  %237 = vst [vmem:[%s2717_s29 + $0x68] sm:$0xff] %v236_v13  ;;  %v240_v15 = vld [vmem:[%s2712_s27 + $0xe8] sm:$0xff] }
  0x26   : > { %239 = vst [vmem:[%s2717_s29 + $0x70] sm:$0xff] %v238_v14  ;;  %v242_v16 = vld [vmem:[%s2712_s27 + $0x100] sm:$0xff]  ;;  %v244_v17 = vld [vmem:[%s2712_s27 + $0x108] sm:$0xff]  ;;  %241 = vst [vmem:[%s2717_s29 + $0x78] sm:$0xff] %v240_v15 }
  0x27   : > { %243 = vst [vmem:[%s2717_s29 + $0x80] sm:$0xff] %v242_v16  ;;  %245 = vst [vmem:[%s2717_s29 + $0x88] sm:$0xff] %v244_v17  ;;  %v246_v18 = vld [vmem:[%s2712_s27 + $0x120] sm:$0xff]  ;;  %v248_v19 = vld [vmem:[%s2712_s27 + $0x128] sm:$0xff] }
  0x28   : > { %v250_v20 = vld [vmem:[%s2712_s27 + $0x140] sm:$0xff]  ;;  %247 = vst [vmem:[%s2717_s29 + $0x90] sm:$0xff] %v246_v18  ;;  %249 = vst [vmem:[%s2717_s29 + $0x98] sm:$0xff] %v248_v19  ;;  %v252_v21 = vld [vmem:[%s2712_s27 + $0x148] sm:$0xff] }
  0x29   : > { %251 = vst [vmem:[%s2717_s29 + $0xa0] sm:$0xff] %v250_v20  ;;  %v254_v22 = vld [vmem:[%s2712_s27 + $0x160] sm:$0xff]  ;;  %v256_v23 = vld [vmem:[%s2712_s27 + $0x168] sm:$0xff]  ;;  %253 = vst [vmem:[%s2717_s29 + $0xa8] sm:$0xff] %v252_v21 }
  0x2a   : > { %255 = vst [vmem:[%s2717_s29 + $0xb0] sm:$0xff] %v254_v22  ;;  %257 = vst [vmem:[%s2717_s29 + $0xb8] sm:$0xff] %v256_v23  ;;  %v258_v24 = vld [vmem:[%s2712_s27 + $0x180] sm:$0xff]  ;;  %v260_v25 = vld [vmem:[%s2712_s27 + $0x188] sm:$0xff] }
  0x2b   : > { %v262_v26 = vld [vmem:[%s2712_s27 + $0x1a0] sm:$0xff]  ;;  %259 = vst [vmem:[%s2717_s29 + $0xc0] sm:$0xff] %v258_v24  ;;  %261 = vst [vmem:[%s2717_s29 + $0xc8] sm:$0xff] %v260_v25  ;;  %v264_v27 = vld [vmem:[%s2712_s27 + $0x1a8] sm:$0xff] }
  0x2c   : > { %263 = vst [vmem:[%s2717_s29 + $0xd0] sm:$0xff] %v262_v26  ;;  %v266_v28 = vld [vmem:[%s2712_s27 + $0x1c0] sm:$0xff]  ;;  %v268_v29 = vld [vmem:[%s2712_s27 + $0x1c8] sm:$0xff]  ;;  %265 = vst [vmem:[%s2717_s29 + $0xd8] sm:$0xff] %v264_v27 }
  0x2d   : > { %267 = vst [vmem:[%s2717_s29 + $0xe0] sm:$0xff] %v266_v28  ;;  %269 = vst [vmem:[%s2717_s29 + $0xe8] sm:$0xff] %v268_v29  ;;  %v270_v30 = vld [vmem:[%s2712_s27 + $0x1e0] sm:$0xff]  ;;  %v272_v31 = vld [vmem:[%s2712_s27 + $0x1e8] sm:$0xff] }
  0x2e   : > { %v274_v32 = vld [vmem:[%s2712_s27 + $0x200] sm:$0xff]  ;;  %271 = vst [vmem:[%s2717_s29 + $0xf0] sm:$0xff] %v270_v30  ;;  %273 = vst [vmem:[%s2717_s29 + $0xf8] sm:$0xff] %v272_v31  ;;  %v276_v33 = vld [vmem:[%s2712_s27 + $0x208] sm:$0xff] }
  0x2f   : > { %275 = vst [vmem:[%s2717_s29 + $0x100] sm:$0xff] %v274_v32  ;;  %v278_v34 = vld [vmem:[%s2712_s27 + $0x220] sm:$0xff]  ;;  %v280_v35 = vld [vmem:[%s2712_s27 + $0x228] sm:$0xff]  ;;  %277 = vst [vmem:[%s2717_s29 + $0x108] sm:$0xff] %v276_v33 }
  0x30   : > { %279 = vst [vmem:[%s2717_s29 + $0x110] sm:$0xff] %v278_v34  ;;  %281 = vst [vmem:[%s2717_s29 + $0x118] sm:$0xff] %v280_v35  ;;  %v282_v36 = vld [vmem:[%s2712_s27 + $0x240] sm:$0xff]  ;;  %v284_v37 = vld [vmem:[%s2712_s27 + $0x248] sm:$0xff] }
  0x31   : > { %v286_v38 = vld [vmem:[%s2712_s27 + $0x260] sm:$0xff]  ;;  %283 = vst [vmem:[%s2717_s29 + $0x120] sm:$0xff] %v282_v36  ;;  %285 = vst [vmem:[%s2717_s29 + $0x128] sm:$0xff] %v284_v37  ;;  %v288_v39 = vld [vmem:[%s2712_s27 + $0x268] sm:$0xff] }
  0x32   : > { %287 = vst [vmem:[%s2717_s29 + $0x130] sm:$0xff] %v286_v38  ;;  %v290_v40 = vld [vmem:[%s2712_s27 + $0x280] sm:$0xff]  ;;  %v292_v41 = vld [vmem:[%s2712_s27 + $0x288] sm:$0xff]  ;;  %289 = vst [vmem:[%s2717_s29 + $0x138] sm:$0xff] %v288_v39 }
  0x33   : > { %291 = vst [vmem:[%s2717_s29 + $0x140] sm:$0xff] %v290_v40  ;;  %293 = vst [vmem:[%s2717_s29 + $0x148] sm:$0xff] %v292_v41  ;;  %v294_v42 = vld [vmem:[%s2712_s27 + $0x2a0] sm:$0xff]  ;;  %v296_v43 = vld [vmem:[%s2712_s27 + $0x2a8] sm:$0xff] }
  0x34   : > { %v298_v44 = vld [vmem:[%s2712_s27 + $0x2c0] sm:$0xff]  ;;  %295 = vst [vmem:[%s2717_s29 + $0x150] sm:$0xff] %v294_v42  ;;  %297 = vst [vmem:[%s2717_s29 + $0x158] sm:$0xff] %v296_v43  ;;  %v300_v45 = vld [vmem:[%s2712_s27 + $0x2c8] sm:$0xff] }
  0x35   : > { %299 = vst [vmem:[%s2717_s29 + $0x160] sm:$0xff] %v298_v44  ;;  %v302_v46 = vld [vmem:[%s2712_s27 + $0x2e0] sm:$0xff]  ;;  %v304_v47 = vld [vmem:[%s2712_s27 + $0x2e8] sm:$0xff]  ;;  %301 = vst [vmem:[%s2717_s29 + $0x168] sm:$0xff] %v300_v45 }
  0x36   : > { %303 = vst [vmem:[%s2717_s29 + $0x170] sm:$0xff] %v302_v46  ;;  %305 = vst [vmem:[%s2717_s29 + $0x178] sm:$0xff] %v304_v47  ;;  %v306_v48 = vld [vmem:[%s2712_s27 + $0x300] sm:$0xff]  ;;  %v308_v49 = vld [vmem:[%s2712_s27 + $0x308] sm:$0xff] }
  0x37   : > { %v310_v50 = vld [vmem:[%s2712_s27 + $0x320] sm:$0xff]  ;;  %307 = vst [vmem:[%s2717_s29 + $0x180] sm:$0xff] %v306_v48  ;;  %309 = vst [vmem:[%s2717_s29 + $0x188] sm:$0xff] %v308_v49  ;;  %v312_v51 = vld [vmem:[%s2712_s27 + $0x328] sm:$0xff] }
  0x38   : > { %311 = vst [vmem:[%s2717_s29 + $0x190] sm:$0xff] %v310_v50  ;;  %v314_v52 = vld [vmem:[%s2712_s27 + $0x340] sm:$0xff]  ;;  %v316_v53 = vld [vmem:[%s2712_s27 + $0x348] sm:$0xff]  ;;  %313 = vst [vmem:[%s2717_s29 + $0x198] sm:$0xff] %v312_v51 }
  0x39   : > { %315 = vst [vmem:[%s2717_s29 + $0x1a0] sm:$0xff] %v314_v52  ;;  %317 = vst [vmem:[%s2717_s29 + $0x1a8] sm:$0xff] %v316_v53  ;;  %v318_v54 = vld [vmem:[%s2712_s27 + $0x360] sm:$0xff]  ;;  %v320_v55 = vld [vmem:[%s2712_s27 + $0x368] sm:$0xff] }
  0x3a   : > { %v322_v56 = vld [vmem:[%s2712_s27 + $0x380] sm:$0xff]  ;;  %319 = vst [vmem:[%s2717_s29 + $0x1b0] sm:$0xff] %v318_v54  ;;  %321 = vst [vmem:[%s2717_s29 + $0x1b8] sm:$0xff] %v320_v55  ;;  %v324_v57 = vld [vmem:[%s2712_s27 + $0x388] sm:$0xff] }
  0x3b   : > { %323 = vst [vmem:[%s2717_s29 + $0x1c0] sm:$0xff] %v322_v56  ;;  %v326_v58 = vld [vmem:[%s2712_s27 + $0x3a0] sm:$0xff]  ;;  %v328_v59 = vld [vmem:[%s2712_s27 + $0x3a8] sm:$0xff]  ;;  %325 = vst [vmem:[%s2717_s29 + $0x1c8] sm:$0xff] %v324_v57 }
  0x3c   : > { %327 = vst [vmem:[%s2717_s29 + $0x1d0] sm:$0xff] %v326_v58  ;;  %329 = vst [vmem:[%s2717_s29 + $0x1d8] sm:$0xff] %v328_v59  ;;  %v330_v60 = vld [vmem:[%s2712_s27 + $0x3c0] sm:$0xff]  ;;  %v332_v61 = vld [vmem:[%s2712_s27 + $0x3c8] sm:$0xff] }
  0x3d   : > { %v334_v62 = vld [vmem:[%s2712_s27 + $0x3e0] sm:$0xff]  ;;  %331 = vst [vmem:[%s2717_s29 + $0x1e0] sm:$0xff] %v330_v60  ;;  %333 = vst [vmem:[%s2717_s29 + $0x1e8] sm:$0xff] %v332_v61  ;;  %v336_v63 = vld [vmem:[%s2712_s27 + $0x3e8] sm:$0xff] }
  0x3e   : > { %335 = vst [vmem:[%s2717_s29 + $0x1f0] sm:$0xff] %v334_v62  ;;  %337 = vst [vmem:[%s2717_s29 + $0x1f8] sm:$0xff] %v336_v63 }
  0x3f PF: > { %343 = sbr.rel (!%p2689_p9) target bundleno = 91 (0x5b), region = 47  ;;  %s345_s7 = sand.u32 (%p2689_p9), 1, %s2559_s16  }
  0x40   : > { %s2303_s11 = sshll.u32 (%p2689_p9), %s2579_s21, 3  ;;  %s2305_s12 = smul.u32 (%p2689_p9), 384, %s345_s7 }
  0x41   : > { %s2851_s24 = scalar_lea.vmem (%p2689_p9), %s3603_s2, %s2303_s11 }
  0x42   : > { %v473_v0 = vld [vmem:[%s2851_s24] sm:$0xff] (%p2689_p9)  ;;  %v475_v1 = vld [vmem:[%s2851_s24 + $0x10] sm:$0xff] (%p2689_p9)  ;;  %s2859_s8 = scalar_lea.vmem (%p2689_p9), [#allocation3], %s2305_s12 }
  0x43   : > { %v477_v2 = vld [vmem:[%s2851_s24 + $0x20] sm:$0xff] (%p2689_p9)  ;;  %v479_v3 = vld [vmem:[%s2851_s24 + $0x30] sm:$0xff] (%p2689_p9)  ;;  %474 = vst [vmem:[%s2859_s8] sm:$0xff] (%p2689_p9), %v473_v0  ;;  %476 = vst [vmem:[%s2859_s8 + $0x8] sm:$0xff] (%p2689_p9), %v475_v1 }
  0x44   : > { %v481_v4 = vld [vmem:[%s2851_s24 + $0x40] sm:$0xff]  ;;  %v483_v5 = vld [vmem:[%s2851_s24 + $0x50] sm:$0xff]  ;;  %478 = vst [vmem:[%s2859_s8 + $0x10] sm:$0xff] %v477_v2  ;;  %480 = vst [vmem:[%s2859_s8 + $0x18] sm:$0xff] %v479_v3 }
  0x45   : > { %482 = vst [vmem:[%s2859_s8 + $0x20] sm:$0xff] %v481_v4  ;;  %484 = vst [vmem:[%s2859_s8 + $0x28] sm:$0xff] %v483_v5  ;;  %v485_v6 = vld [vmem:[%s2851_s24 + $0x60] sm:$0xff]  ;;  %v487_v7 = vld [vmem:[%s2851_s24 + $0x70] sm:$0xff] }
  0x46   : > { %v489_v8 = vld [vmem:[%s2851_s24 + $0x80] sm:$0xff]  ;;  %486 = vst [vmem:[%s2859_s8 + $0x30] sm:$0xff] %v485_v6  ;;  %488 = vst [vmem:[%s2859_s8 + $0x38] sm:$0xff] %v487_v7  ;;  %v491_v9 = vld [vmem:[%s2851_s24 + $0x90] sm:$0xff] }
  0x47   : > { %490 = vst [vmem:[%s2859_s8 + $0x40] sm:$0xff] %v489_v8  ;;  %v493_v10 = vld [vmem:[%s2851_s24 + $0xa0] sm:$0xff]  ;;  %v495_v11 = vld [vmem:[%s2851_s24 + $0xb0] sm:$0xff]  ;;  %492 = vst [vmem:[%s2859_s8 + $0x48] sm:$0xff] %v491_v9 }
  0x48   : > { %494 = vst [vmem:[%s2859_s8 + $0x50] sm:$0xff] %v493_v10  ;;  %496 = vst [vmem:[%s2859_s8 + $0x58] sm:$0xff] %v495_v11  ;;  %v497_v12 = vld [vmem:[%s2851_s24 + $0xc0] sm:$0xff]  ;;  %v499_v13 = vld [vmem:[%s2851_s24 + $0xd0] sm:$0xff] }
  0x49   : > { %v501_v14 = vld [vmem:[%s2851_s24 + $0xe0] sm:$0xff]  ;;  %498 = vst [vmem:[%s2859_s8 + $0x60] sm:$0xff] %v497_v12  ;;  %500 = vst [vmem:[%s2859_s8 + $0x68] sm:$0xff] %v499_v13  ;;  %v503_v15 = vld [vmem:[%s2851_s24 + $0xf0] sm:$0xff] }
  0x4a   : > { %502 = vst [vmem:[%s2859_s8 + $0x70] sm:$0xff] %v501_v14  ;;  %v505_v16 = vld [vmem:[%s2851_s24 + $0x100] sm:$0xff]  ;;  %v507_v17 = vld [vmem:[%s2851_s24 + $0x110] sm:$0xff]  ;;  %504 = vst [vmem:[%s2859_s8 + $0x78] sm:$0xff] %v503_v15 }
  0x4b   : > { %506 = vst [vmem:[%s2859_s8 + $0x80] sm:$0xff] %v505_v16  ;;  %508 = vst [vmem:[%s2859_s8 + $0x88] sm:$0xff] %v507_v17  ;;  %v509_v18 = vld [vmem:[%s2851_s24 + $0x120] sm:$0xff]  ;;  %v511_v19 = vld [vmem:[%s2851_s24 + $0x130] sm:$0xff] }
  0x4c   : > { %v513_v20 = vld [vmem:[%s2851_s24 + $0x140] sm:$0xff]  ;;  %510 = vst [vmem:[%s2859_s8 + $0x90] sm:$0xff] %v509_v18  ;;  %512 = vst [vmem:[%s2859_s8 + $0x98] sm:$0xff] %v511_v19  ;;  %v515_v21 = vld [vmem:[%s2851_s24 + $0x150] sm:$0xff] }
  0x4d   : > { %514 = vst [vmem:[%s2859_s8 + $0xa0] sm:$0xff] %v513_v20  ;;  %v517_v22 = vld [vmem:[%s2851_s24 + $0x160] sm:$0xff]  ;;  %v519_v23 = vld [vmem:[%s2851_s24 + $0x170] sm:$0xff]  ;;  %516 = vst [vmem:[%s2859_s8 + $0xa8] sm:$0xff] %v515_v21 }
  0x4e   : > { %518 = vst [vmem:[%s2859_s8 + $0xb0] sm:$0xff] %v517_v22  ;;  %520 = vst [vmem:[%s2859_s8 + $0xb8] sm:$0xff] %v519_v23  ;;  %v521_v24 = vld [vmem:[%s2851_s24 + $0x180] sm:$0xff]  ;;  %v523_v25 = vld [vmem:[%s2851_s24 + $0x190] sm:$0xff] }
  0x4f   : > { %v525_v26 = vld [vmem:[%s2851_s24 + $0x1a0] sm:$0xff]  ;;  %522 = vst [vmem:[%s2859_s8 + $0xc0] sm:$0xff] %v521_v24  ;;  %524 = vst [vmem:[%s2859_s8 + $0xc8] sm:$0xff] %v523_v25  ;;  %v527_v27 = vld [vmem:[%s2851_s24 + $0x1b0] sm:$0xff] }
  0x50   : > { %526 = vst [vmem:[%s2859_s8 + $0xd0] sm:$0xff] %v525_v26  ;;  %v529_v28 = vld [vmem:[%s2851_s24 + $0x1c0] sm:$0xff]  ;;  %v531_v29 = vld [vmem:[%s2851_s24 + $0x1d0] sm:$0xff]  ;;  %528 = vst [vmem:[%s2859_s8 + $0xd8] sm:$0xff] %v527_v27 }
  0x51   : > { %530 = vst [vmem:[%s2859_s8 + $0xe0] sm:$0xff] %v529_v28  ;;  %532 = vst [vmem:[%s2859_s8 + $0xe8] sm:$0xff] %v531_v29  ;;  %v533_v30 = vld [vmem:[%s2851_s24 + $0x1e0] sm:$0xff]  ;;  %v535_v31 = vld [vmem:[%s2851_s24 + $0x1f0] sm:$0xff] }
  0x52   : > { %v537_v32 = vld [vmem:[%s2851_s24 + $0x200] sm:$0xff]  ;;  %534 = vst [vmem:[%s2859_s8 + $0xf0] sm:$0xff] %v533_v30  ;;  %536 = vst [vmem:[%s2859_s8 + $0xf8] sm:$0xff] %v535_v31  ;;  %v539_v33 = vld [vmem:[%s2851_s24 + $0x210] sm:$0xff] }
  0x53   : > { %538 = vst [vmem:[%s2859_s8 + $0x100] sm:$0xff] %v537_v32  ;;  %v541_v34 = vld [vmem:[%s2851_s24 + $0x220] sm:$0xff]  ;;  %v543_v35 = vld [vmem:[%s2851_s24 + $0x230] sm:$0xff]  ;;  %540 = vst [vmem:[%s2859_s8 + $0x108] sm:$0xff] %v539_v33 }
  0x54   : > { %542 = vst [vmem:[%s2859_s8 + $0x110] sm:$0xff] %v541_v34  ;;  %544 = vst [vmem:[%s2859_s8 + $0x118] sm:$0xff] %v543_v35  ;;  %v545_v36 = vld [vmem:[%s2851_s24 + $0x240] sm:$0xff]  ;;  %v547_v37 = vld [vmem:[%s2851_s24 + $0x250] sm:$0xff] }
  0x55   : > { %v549_v38 = vld [vmem:[%s2851_s24 + $0x260] sm:$0xff]  ;;  %546 = vst [vmem:[%s2859_s8 + $0x120] sm:$0xff] %v545_v36  ;;  %548 = vst [vmem:[%s2859_s8 + $0x128] sm:$0xff] %v547_v37  ;;  %v551_v39 = vld [vmem:[%s2851_s24 + $0x270] sm:$0xff] }
  0x56   : > { %550 = vst [vmem:[%s2859_s8 + $0x130] sm:$0xff] %v549_v38  ;;  %v553_v40 = vld [vmem:[%s2851_s24 + $0x280] sm:$0xff]  ;;  %v555_v41 = vld [vmem:[%s2851_s24 + $0x290] sm:$0xff]  ;;  %552 = vst [vmem:[%s2859_s8 + $0x138] sm:$0xff] %v551_v39 }
  0x57   : > { %554 = vst [vmem:[%s2859_s8 + $0x140] sm:$0xff] %v553_v40  ;;  %556 = vst [vmem:[%s2859_s8 + $0x148] sm:$0xff] %v555_v41  ;;  %v557_v42 = vld [vmem:[%s2851_s24 + $0x2a0] sm:$0xff]  ;;  %v559_v43 = vld [vmem:[%s2851_s24 + $0x2b0] sm:$0xff] }
  0x58   : > { %v561_v44 = vld [vmem:[%s2851_s24 + $0x2c0] sm:$0xff]  ;;  %558 = vst [vmem:[%s2859_s8 + $0x150] sm:$0xff] %v557_v42  ;;  %560 = vst [vmem:[%s2859_s8 + $0x158] sm:$0xff] %v559_v43  ;;  %v563_v45 = vld [vmem:[%s2851_s24 + $0x2d0] sm:$0xff] }
  0x59   : > { %562 = vst [vmem:[%s2859_s8 + $0x160] sm:$0xff] %v561_v44  ;;  %v565_v46 = vld [vmem:[%s2851_s24 + $0x2e0] sm:$0xff]  ;;  %v567_v47 = vld [vmem:[%s2851_s24 + $0x2f0] sm:$0xff]  ;;  %564 = vst [vmem:[%s2859_s8 + $0x168] sm:$0xff] %v563_v45 }
  0x5a   : > { %566 = vst [vmem:[%s2859_s8 + $0x170] sm:$0xff] %v565_v46  ;;  %568 = vst [vmem:[%s2859_s8 + $0x178] sm:$0xff] %v567_v47 }
  0x5b PF: > { %p2193_p12 = scmp.ge.s32.totalorder %s2587_s23, 1  ;;  %p581_p13 = scmp.lt.s32.totalorder %s2587_s23, 5 }
  0x5d   : > { %p582_p0 = pnand %p2193_p12, %p581_p13 }
  0x5e   : > { %s595_s28 = sand.u32 (!%p582_p0), 1, %s2555_s15   ;;  %s2196_s15 = sshll.u32 (!%p582_p0), %s2575_s20, 5 }
  0x5f   : > { %585 = sbr.rel (%p582_p0) target bundleno = 509 (0x1fd), region = 89  ;;  %p634_p1 = scmp.lt.s32.totalorder (!%p582_p0), %s2196_s15, 63 }
  0x60   : > { %s2306_s30 = smul.u32 (!%p582_p0), 384, %s595_s28  ;;  %s3075_s12 = sshll.u32 (!%p582_p0), %s2571_s19, 1 }
  0x61   : > { %p644_p2 = scmp.lt.s32.totalorder (!%p582_p0), %s3075_s12, 3  ;;  %s588_s13 = sand.u32 (!%p582_p0), 1, %s2563_s17  }
  0x62   : > { %s2955_s6 = scalar_lea.vmem (!%p582_p0), [#allocation3], %s2306_s30  ;;  %s3082_s24 = sshll.u32 (!%p582_p0), %s588_s13, 9 }
  0x63   : > { %s3094_s17 = scalar_lea.vmem (!%p582_p0), [#allocation2], %s3082_s24  ;;  %s3119_s30 = scalar_lea.vmem (!%p582_p0), [#allocation4], %s3082_s24 }
  0x64   : > { %v2589_v48 = vmov 0   ;;  %v2381_v49 = vld [vmem:[%s2955_s6 + $0x74] ss:$8 sps:$4 sm:$0xff]   ;;  %v2383_v50 = vld [vmem:[%s2955_s6 + $0x70] ss:$8 sps:$4 sm:$0xff]   ;;  %s3624_s15 = smov (!%p634_p1, %s2196_s15), 63 }
  0x65   : > { %1548 = vmatprep.mubr.bf16.mxu1 %v2589_v48  ;;  %1323 = vmatprep.subr.bf16.mxu0 %v2381_v49  ;;  %v2384_v51 = vld [vmem:[%s2955_s6 + $0x64] ss:$8 sps:$4 sm:$0xff]   ;;  %v2386_v52 = vld [vmem:[%s2955_s6 + $0x60] ss:$8 sps:$4 sm:$0xff]   ;;  %v2387_v53 = vld [vmem:[%s2955_s6 + $0x54] ss:$8 sps:$4 sm:$0xff]  }
  0x66   : > { %1324 = vmatpush1.bf16.msra.mxu0 %v2383_v50  ;;  %v2389_v54 = vld [vmem:[%s2955_s6 + $0x50] ss:$8 sps:$4 sm:$0xff]   ;;  %v2390_v55 = vld [vmem:[%s2955_s6 + $0x44] ss:$8 sps:$4 sm:$0xff]   ;;  %v2392_v56 = vld [vmem:[%s2955_s6 + $0x40] ss:$8 sps:$4 sm:$0xff]  }
  0x67   : > { %1325 = vmatprep.subr.bf16.mxu0 %v2384_v51  ;;  %v2404_v57 = vld [vmem:[%s2955_s6 + $0x174] ss:$8 sps:$4 sm:$0xff]   ;;  %v2407_v58 = vld [vmem:[%s2955_s6 + $0x170] ss:$8 sps:$4 sm:$0xff]   ;;  %v2410_v60 = vld [vmem:[%s2955_s6 + $0x164] ss:$8 sps:$4 sm:$0xff]  }
  0x68   : > { %v2393_v59 = vld [vmem:[%s2955_s6 + $0x34] ss:$8 sps:$4 sm:$0xff]   ;;  %1516 = vmatprep.subr.bf16.mxu1 %v2404_v57  ;;  %v2413_v61 = vld [vmem:[%s2955_s6 + $0x160] ss:$8 sps:$4 sm:$0xff]   ;;  %v2395_v62 = vld [vmem:[%s2955_s6 + $0x30] ss:$8 sps:$4 sm:$0xff]  }
  0x69   : > { %1517 = vmatpush1.bf16.msra.mxu1 %v2407_v58  ;;  %v2396_v63 = vld [vmem:[%s2955_s6 + $0x24] ss:$8 sps:$4 sm:$0xff]   ;;  %v2416_v0 = vld [vmem:[%s2955_s6 + $0x154] ss:$8 sps:$4 sm:$0xff]   ;;  %v2419_v1 = vld [vmem:[%s2955_s6 + $0x150] ss:$8 sps:$4 sm:$0xff]  }
  0x6a   : > { %1326 = vmatpush1.bf16.msra.mxu0 %v2386_v52  ;;  %1518 = vmatprep.subr.bf16.mxu1 %v2410_v60  ;;  %v2398_v2 = vld [vmem:[%s2955_s6 + $0x20] ss:$8 sps:$4 sm:$0xff]   ;;  %v2422_v3 = vld [vmem:[%s2955_s6 + $0x144] ss:$8 sps:$4 sm:$0xff]   ;;  %v2399_v4 = vld [vmem:[%s2955_s6 + $0x14] ss:$8 sps:$4 sm:$0xff]  }
  0x6b   : > { %1327 = vmatprep.subr.bf16.mxu0 %v2387_v53  ;;  %v2401_v5 = vld [vmem:[%s2955_s6 + $0x10] ss:$8 sps:$4 sm:$0xff]   ;;  %v2425_v6 = vld [vmem:[%s2955_s6 + $0x140] ss:$8 sps:$4 sm:$0xff]   ;;  %v2428_v7 = vld [vmem:[%s2955_s6 + $0x134] ss:$8 sps:$4 sm:$0xff]  }
  0x6c   : > { %v2402_v8 = vld [vmem:[%s2955_s6 + $0x4] ss:$8 sps:$4 sm:$0xff]   ;;  %v2431_v9 = vld [vmem:[%s2955_s6 + $0x130] ss:$8 sps:$4 sm:$0xff]   ;;  %s2307_s27 = smul.u32 12, %s3624_s15 }
  0x6d   : > { %1519 = vmatpush1.bf16.msra.mxu1 %v2413_v61  ;;  %v2406_v10 = vld [vmem:[%s2955_s6] ss:$8 sps:$4 sm:$0xff]   ;;  %v2434_v11 = vld [vmem:[%s2955_s6 + $0x124] ss:$8 sps:$4 sm:$0xff]   ;;  %v2408_v12 = vld [vmem:[%s2955_s6 + $0xf4] ss:$8 sps:$4 sm:$0xff]  }
  0x6e   : > { %1328 = vmatpush1.bf16.msra.mxu0 %v2389_v54  ;;  %1520 = vmatprep.subr.bf16.mxu1 %v2416_v0  ;;  %v2412_v13 = vld [vmem:[%s2955_s6 + $0xf0] ss:$8 sps:$4 sm:$0xff]   ;;  %v2437_v14 = vld [vmem:[%s2955_s6 + $0x120] ss:$8 sps:$4 sm:$0xff]   ;;  %s2991_s11 = scalar_lea.vmem %s3601_s0, %s2307_s27  ;;  %v2440_v15 = vld [vmem:[%s2955_s6 + $0x114] ss:$8 sps:$4 sm:$0xff]  }
  0x6f   : > { %1329 = vmatprep.subr.bf16.mxu0 %v2390_v55  ;;  %v2414_v16 = vld [vmem:[%s2955_s6 + $0xe4] ss:$8 sps:$4 sm:$0xff]   ;;  %v2418_v17 = vld [vmem:[%s2955_s6 + $0xe0] ss:$8 sps:$4 sm:$0xff]   ;;  %v2443_v18 = vld [vmem:[%s2955_s6 + $0x110] ss:$8 sps:$4 sm:$0xff]  }
  0x70   : > { %v2456_v19 = vld [vmem:[%s2991_s11 + $0x4] ss:$12 sps:$4 sm:$0xff]   ;;  %v2420_v21 = vld [vmem:[%s2955_s6 + $0xd4] ss:$8 sps:$4 sm:$0xff]   ;;  %v2449_v22 = vld [vmem:[%s2955_s6 + $0x100] ss:$8 sps:$4 sm:$0xff]  }
  0x71   : > { %1521 = vmatpush1.bf16.msra.mxu1 %v2419_v1  ;;  %v2446_v20 = vld [vmem:[%s2955_s6 + $0x104] ss:$8 sps:$4 sm:$0xff]   ;;  %1355 = vmatprep.mubr.bf16.mxu0 %v2456_v19  ;;  %v2424_v23 = vld [vmem:[%s2955_s6 + $0xd0] ss:$8 sps:$4 sm:$0xff]   ;;  %v2452_v25 = vld [vmem:[%s2991_s11 + $0x8] ss:$12 sps:$4 sm:$0xff]  }
  0x72   : > { %1330 = vmatpush1.bf16.msra.mxu0 %v2392_v56  ;;  %1522 = vmatprep.subr.bf16.mxu1 %v2422_v3  ;;  %v2426_v24 = vld [vmem:[%s2955_s6 + $0xc4] ss:$8 sps:$4 sm:$0xff]   ;;  %v2430_v26 = vld [vmem:[%s2955_s6 + $0xc0] ss:$8 sps:$4 sm:$0xff]   ;;  %v2432_v27 = vld [vmem:[%s2955_s6 + $0xb4] ss:$8 sps:$4 sm:$0xff]  }
  0x73   : > { %1331 = vmatprep.subr.bf16.mxu0 %v2393_v59  ;;  %v2436_v28 = vld [vmem:[%s2955_s6 + $0xb0] ss:$8 sps:$4 sm:$0xff]   ;;  %v2438_v29 = vld [vmem:[%s2955_s6 + $0xa4] ss:$8 sps:$4 sm:$0xff]   ;;  %v2442_v31 = vld [vmem:[%s2955_s6 + $0xa0] ss:$8 sps:$4 sm:$0xff]  }
  0x74   : > { %v2457_v30 = vld [vmem:[%s2991_s11 + $0x20] ss:$12 sps:$4 sm:$0xff]   ;;  %v2444_v32 = vld [vmem:[%s2955_s6 + $0x94] ss:$8 sps:$4 sm:$0xff]   ;;  %v2448_v33 = vld [vmem:[%s2955_s6 + $0x90] ss:$8 sps:$4 sm:$0xff]  }
  0x75   : > { %1523 = vmatpush1.bf16.msra.mxu1 %v2425_v6  ;;  %v2450_v34 = vld [vmem:[%s2955_s6 + $0x84] ss:$8 sps:$4 sm:$0xff]   ;;  %v2453_v36 = vld [vmem:[%s2955_s6 + $0x80] ss:$8 sps:$4 sm:$0xff]   ;;  %v2465_v39 = vld [vmem:[%s2991_s11 + $0x50] ss:$12 sps:$4 sm:$0xff]  }
  0x76   : > { %1332 = vmatpush1.bf16.msra.mxu0 %v2395_v62  ;;  %1524 = vmatprep.subr.bf16.mxu1 %v2428_v7  ;;  %v2461_v35 = vld [vmem:[%s2991_s11 + $0x38] ss:$12 sps:$4 sm:$0xff]   ;;  %v2454_v37 = vld [vmem:[%s2991_s11] ss:$12 sps:$4 sm:$0xff]   ;;  %v2458_v38 = vld [vmem:[%s2991_s11 + $0x1c] ss:$12 sps:$4 sm:$0xff]  }
  0x77   : > { %1333 = vmatprep.subr.bf16.mxu0 %v2396_v63  ;;  %v2460_v40 = vld [vmem:[%s2991_s11 + $0x18] ss:$12 sps:$4 sm:$0xff]   ;;  %v2462_v41 = vld [vmem:[%s2991_s11 + $0x34] ss:$12 sps:$4 sm:$0xff]   ;;  %v2464_v43 = vld [vmem:[%s2991_s11 + $0x30] ss:$12 sps:$4 sm:$0xff]  }
  0x78   : > { %v2469_v42 = vld [vmem:[%s2991_s11 + $0x68] ss:$12 sps:$4 sm:$0xff]   ;;  %v2466_v44 = vld [vmem:[%s2991_s11 + $0x4c] ss:$12 sps:$4 sm:$0xff]   ;;  %v2470_v47 = vld [vmem:[%s2991_s11 + $0x64] ss:$12 sps:$4 sm:$0xff]  }
  0x79   : > { %1525 = vmatpush1.bf16.msra.mxu1 %v2431_v9  ;;  %v2473_v45 = vld [vmem:[%s2991_s11 + $0x80] ss:$12 sps:$4 sm:$0xff]   ;;  %v2468_v46 = vld [vmem:[%s2991_s11 + $0x48] ss:$12 sps:$4 sm:$0xff]   ;;  %v2477_v49 = vld [vmem:[%s2991_s11 + $0x98] ss:$12 sps:$4 sm:$0xff]  }
  0x7a   : > { %1334 = vmatpush1.bf16.msra.mxu0 %v2398_v2  ;;  %1526 = vmatprep.subr.bf16.mxu1 %v2434_v11  ;;  %v2472_v50 = vld [vmem:[%s2991_s11 + $0x60] ss:$12 sps:$4 sm:$0xff]   ;;  %v2474_v51 = vld [vmem:[%s2991_s11 + $0x7c] ss:$12 sps:$4 sm:$0xff]   ;;  %v2476_v53 = vld [vmem:[%s2991_s11 + $0x78] ss:$12 sps:$4 sm:$0xff]  }
  0x7b   : > { %1335 = vmatprep.subr.bf16.mxu0 %v2399_v4  ;;  %v2481_v52 = vld [vmem:[%s2991_s11 + $0xb0] ss:$12 sps:$4 sm:$0xff]   ;;  %v2478_v54 = vld [vmem:[%s2991_s11 + $0x94] ss:$12 sps:$4 sm:$0xff]   ;;  %v2482_v57 = vld [vmem:[%s2991_s11 + $0xac] ss:$12 sps:$4 sm:$0xff]  }
  0x7c   : > { %v2485_v55 = vld [vmem:[%s2991_s11 + $0xc8] ss:$12 sps:$4 sm:$0xff]   ;;  %v2480_v56 = vld [vmem:[%s2991_s11 + $0x90] ss:$12 sps:$4 sm:$0xff]   ;;  %v2489_v58 = vld [vmem:[%s2991_s11 + $0xe0] ss:$12 sps:$4 sm:$0xff]  }
  0x7d   : > { %1527 = vmatpush1.bf16.msra.mxu1 %v2437_v14  ;;  %v2484_v59 = vld [vmem:[%s2991_s11 + $0xa8] ss:$12 sps:$4 sm:$0xff]   ;;  %v2486_v60 = vld [vmem:[%s2991_s11 + $0xc4] ss:$12 sps:$4 sm:$0xff]   ;;  %v2488_v62 = vld [vmem:[%s2991_s11 + $0xc0] ss:$12 sps:$4 sm:$0xff]  }
  0x7e   : > { %1336 = vmatpush1.bf16.msra.mxu0 %v2401_v5  ;;  %1528 = vmatprep.subr.bf16.mxu1 %v2440_v15  ;;  %v2493_v61 = vld [vmem:[%s2991_s11 + $0xf8] ss:$12 sps:$4 sm:$0xff]   ;;  %v2490_v63 = vld [vmem:[%s2991_s11 + $0xdc] ss:$12 sps:$4 sm:$0xff]   ;;  %v2494_v2 = vld [vmem:[%s2991_s11 + $0xf4] ss:$12 sps:$4 sm:$0xff]  }
  0x7f   : > { %1337 = vmatprep.subr.bf16.mxu0 %v2402_v8  ;;  %v2497_v0 = vld [vmem:[%s2991_s11 + $0x110] ss:$12 sps:$4 sm:$0xff]   ;;  %v2492_v1 = vld [vmem:[%s2991_s11 + $0xd8] ss:$12 sps:$4 sm:$0xff]   ;;  %v2501_v3 = vld [vmem:[%s2991_s11 + $0x128] ss:$12 sps:$4 sm:$0xff]  }
  0x80   : > { %v2496_v4 = vld [vmem:[%s2991_s11 + $0xf0] ss:$12 sps:$4 sm:$0xff]   ;;  %v2498_v5 = vld [vmem:[%s2991_s11 + $0x10c] ss:$12 sps:$4 sm:$0xff]   ;;  %v2500_v7 = vld [vmem:[%s2991_s11 + $0x108] ss:$12 sps:$4 sm:$0xff]  }
  0x81   : > { %1529 = vmatpush1.bf16.msra.mxu1 %v2443_v18  ;;  %v2505_v6 = vld [vmem:[%s2991_s11 + $0x140] ss:$12 sps:$4 sm:$0xff]   ;;  %v2502_v8 = vld [vmem:[%s2991_s11 + $0x124] ss:$12 sps:$4 sm:$0xff]   ;;  %v2506_v11 = vld [vmem:[%s2991_s11 + $0x13c] ss:$12 sps:$4 sm:$0xff]  }
  0x82   : > { %1338 = vmatpush1.bf16.msra.mxu0 %v2406_v10  ;;  %1530 = vmatprep.subr.bf16.mxu1 %v2446_v20  ;;  %v2509_v9 = vld [vmem:[%s2991_s11 + $0x158] ss:$12 sps:$4 sm:$0xff]   ;;  %v2504_v10 = vld [vmem:[%s2991_s11 + $0x120] ss:$12 sps:$4 sm:$0xff]   ;;  %v2512_v15 = vld [vmem:[%s2991_s11 + $0x150] ss:$12 sps:$4 sm:$0xff]  }
  0x83   : > { %1339 = vmatprep.subr.bf16.mxu0 %v2408_v12  ;;  %v2513_v12 = vld [vmem:[%s2991_s11 + $0x170] ss:$12 sps:$4 sm:$0xff]   ;;  %v2510_v14 = vld [vmem:[%s2991_s11 + $0x154] ss:$12 sps:$4 sm:$0xff]   ;;  %s645_s14 = scalar_select %p644_p2, %s3075_s12, 3 }
  0x84   : > { %s2304_s6 = sshll.u32 (%p2696_p10), %s2575_s20, 7 }
  0x85   : > { %1531 = vmatpush1.bf16.msra.mxu1 %v2449_v22  ;;  %v1711_v22 = vlaneseq  ;;  %s646_s28 = scalar_lea.vmem %s3604_s3, %s645_s14  ;;  %s1923_s9 = sadd.s32 (%p2696_p10), %s2304_s6, %s3075_s12 }
  0x86   : > { %1340 = vmatpush2.bf16.msra.mxu0 %v2412_v13  ;;  %v2508_v13 = vld [vmem:[%s2991_s11 + $0x138] ss:$12 sps:$4 sm:$0xff]   ;;  %s2299_s15 = sshll.u32 (%p2696_p10), %s1923_s9, 3 }
  0x87   : > { %1341 = vmatprep.subr.bf16.mxu0 %v2414_v16  ;;  %v2514_v16 = vld [vmem:[%s2991_s11 + $0x16c] ss:$12 sps:$4 sm:$0xff]   ;;  %s3453_s7 = scalar_lea.vmem (%p2696_p10), %s3605_s4, %s2299_s15 }
  0x88   : > { %1549 = vmatmul.mubr.bf16.vlgmr.msra.gmra.mxu1 %v2452_v25  ;;  %v1712_v25 = vshrl.u32 %v1711_v22, 7 }
  0x89   : > { %1558 = vmatprep.mubr.bf16.mxu1 %v2589_v48 }
  0x8a   : > { %1342 = vmatpush2.bf16.msra.mxu0 %v2418_v17  ;;  %v2516_v17 = vld [vmem:[%s2991_s11 + $0x168] ss:$12 sps:$4 sm:$0xff]  }
  0x8b   : > { %1343 = vmatprep.subr.bf16.mxu0 %v2420_v21 }
  0x8e   : > { %1344 = vmatpush2.bf16.msra.mxu0 %v2424_v23 }
  0x8f   : > { %1345 = vmatprep.subr.bf16.mxu0 %v2426_v24 }
  0x90   : > { %1559 = vmatmul.mubr.bf16.gmra.mxu1 %v2457_v30  ;;  %v763_v30 = vld [vmem:[%s3094_s17] sm:$0xff] }
  0x91   : > { %1568 = vmatprep.mubr.bf16.mxu1 %v2589_v48 }
  0x92   : > { %1346 = vmatpush2.bf16.msra.mxu0 %v2430_v26 }
  0x93   : > { %1347 = vmatprep.subr.bf16.mxu0 %v2432_v27 }
  0x96   : > { %1348 = vmatpush2.bf16.msra.mxu0 %v2436_v28  ;;  %v1713_v28 = vsub.s32 0, %v1712_v25 }
  0x97   : > { %1349 = vmatprep.subr.bf16.mxu0 %v2438_v29 }
  0x98   : > { %1569 = vmatmul.mubr.bf16.gmra.mxu1 %v2461_v35  ;;  %v764_v35 = vld [vmem:[%s3094_s17 + $0x8] sm:$0xff] }
  0x99   : > { %1578 = vmatprep.mubr.bf16.mxu1 %v2589_v48 }
  0x9a   : > { %1350 = vmatpush2.bf16.msra.mxu0 %v2442_v31  ;;  %v1709_v31 = vld [vmem:[%s646_s28] sm:$0x3] }
  0x9b   : > { %1351 = vmatprep.subr.bf16.mxu0 %v2444_v32  ;;  %v1717_v32 = vsub.s32 1, %v1712_v25  ;;  %v772_v25 = vld [vmem:[%s3094_s17 + $0x48] sm:$0xff] }
  0x9e   : > { %1352 = vmatpush2.bf16.msra.mxu0 %v2448_v33 }
  0x9f   : > { %1353 = vmatprep.subr.bf16.mxu0 %v2450_v34 }
  0xa0   : > { %1579 = vmatmul.mubr.bf16.gmra.mxu1 %v2465_v39 }
  0xa1   : > { %1588 = vmatprep.mubr.bf16.mxu1 %v2589_v48 }
  0xa2   : > { %1354 = vmatpush2.bf16.msra.mxu0 %v2453_v36 }
  0xa5   : > { %1356 = vmatmul.mubr.bf16.vlgmr.msra.gmra.mxu0 %v2454_v37  ;;  %v3100_v37 = vrot.slane %v1709_v31, %v1713_v28 }
  0xa6   : > { %1365 = vmatprep.mubr.bf16.mxu0 %v2458_v38 }
  0xa8   : > { %1589 = vmatmul.mubr.bf16.gmra.mxu1 %v2469_v42 }
  0xa9   : > { %1598 = vmatprep.mubr.bf16.mxu1 %v2589_v48 }
  0xad   : > { %1366 = vmatmul.mubr.bf16.gmra.mxu0 %v2460_v40  ;;  %v765_v40 = vld [vmem:[%s3094_s17 + $0x10] sm:$0xff] }
  0xae   : > { %1375 = vmatprep.mubr.bf16.mxu0 %v2462_v41 }
  0xb0   : > { %1599 = vmatmul.mubr.bf16.gmra.mxu1 %v2473_v45 }
  0xb1   : > { %1608 = vmatprep.mubr.bf16.mxu1 %v2589_v48 }
  0xb5   : > { %1376 = vmatmul.mubr.bf16.gmra.mxu0 %v2464_v43  ;;  %v3105_v43 = vrot.slane %v1709_v31, %v1717_v32 }
  0xb6   : > { %1385 = vmatprep.mubr.bf16.mxu0 %v2466_v44 }
  0xb8   : > { %1609 = vmatmul.mubr.bf16.gmra.mxu1 %v2477_v49 }
  0xb9   : > { %1618 = vmatprep.mubr.bf16.mxu1 %v2589_v48 }
  0xbd   : > { %1386 = vmatmul.mubr.bf16.gmra.mxu0 %v2468_v46  ;;  %v766_v46 = vld [vmem:[%s3094_s17 + $0x18] sm:$0xff] }
  0xbe   : > { %1395 = vmatprep.mubr.bf16.mxu0 %v2470_v47 }
  0xc0   : > { %1619 = vmatmul.mubr.bf16.gmra.mxu1 %v2481_v52 }
  0xc1   : > { %1628 = vmatprep.mubr.bf16.mxu1 %v2589_v48 }
  0xc5   : > { %1396 = vmatmul.mubr.bf16.gmra.mxu0 %v2472_v50 }
  0xc6   : > { %1405 = vmatprep.mubr.bf16.mxu0 %v2474_v51 }
  0xc8   : > { %1629 = vmatmul.mubr.bf16.gmra.mxu1 %v2485_v55 }
  0xc9   : > { %1638 = vmatprep.mubr.bf16.mxu1 %v2589_v48 }
  0xcd   : > { %1406 = vmatmul.mubr.bf16.gmra.mxu0 %v2476_v53  ;;  %v767_v53 = vld [vmem:[%s3094_s17 + $0x20] sm:$0xff] }
  0xce   : > { %1415 = vmatprep.mubr.bf16.mxu0 %v2478_v54 }
  0xd0   : > { %1639 = vmatmul.mubr.bf16.gmra.mxu1 %v2489_v58 }
  0xd1   : > { %1648 = vmatprep.mubr.bf16.mxu1 %v2589_v48 }
  0xd5   : > { %1416 = vmatmul.mubr.bf16.gmra.mxu0 %v2480_v56 }
  0xd6   : > { %1425 = vmatprep.mubr.bf16.mxu0 %v2482_v57 }
  0xd8   : > { %1649 = vmatmul.mubr.bf16.gmra.mxu1 %v2493_v61 }
  0xd9   : > { %1658 = vmatprep.mubr.bf16.mxu1 %v2589_v48 }
  0xdd   : > { %1426 = vmatmul.mubr.bf16.gmra.mxu0 %v2484_v59 }
  0xde   : > { %1435 = vmatprep.mubr.bf16.mxu0 %v2486_v60  ;;  %v768_v60 = vld [vmem:[%s3094_s17 + $0x28] sm:$0xff] }
  0xe0   : > { %1659 = vmatmul.mubr.bf16.gmra.mxu1 %v2497_v0 }
  0xe1   : > { %1668 = vmatprep.mubr.bf16.mxu1 %v2589_v48 }
  0xe5   : > { %1436 = vmatmul.mubr.bf16.gmra.mxu0 %v2488_v62 }
  0xe6   : > { %1445 = vmatprep.mubr.bf16.mxu0 %v2490_v63 }
  0xe8   : > { %1669 = vmatmul.mubr.bf16.gmra.mxu1 %v2501_v3  ;;  %v769_v3 = vld [vmem:[%s3094_s17 + $0x30] sm:$0xff] }
  0xe9   : > { %1678 = vmatprep.mubr.bf16.mxu1 %v2589_v48 }
  0xed   : > { %1446 = vmatmul.mubr.bf16.gmra.mxu0 %v2492_v1 }
  0xee   : > { %1455 = vmatprep.mubr.bf16.mxu0 %v2494_v2 }
  0xf0   : > { %1679 = vmatmul.mubr.bf16.gmra.mxu1 %v2505_v6 }
  0xf1   : > { %1688 = vmatprep.mubr.bf16.mxu1 %v2589_v48 }
  0xf5   : > { %1456 = vmatmul.mubr.bf16.gmra.mxu0 %v2496_v4 }
  0xf6   : > { %1465 = vmatprep.mubr.bf16.mxu0 %v2498_v5 }
  0xf8   : > { %1689 = vmatmul.mubr.bf16.gmra.mxu1 %v2509_v9 }
  0xf9   : > { %1698 = vmatprep.mubr.bf16.mxu1 %v2589_v48 }
  0xfd   : > { %1466 = vmatmul.mubr.bf16.gmra.mxu0 %v2500_v7 }
  0xfe   : > { %1475 = vmatprep.mubr.bf16.mxu0 %v2502_v8 }
 0x100   : > { %1699 = vmatmul.mubr.bf16.gmra.mxu1 %v2513_v12 }
 0x105   : > { %1476 = vmatmul.mubr.bf16.gmra.mxu0 %v2504_v10  ;;  %v770_v10 = vld [vmem:[%s3094_s17 + $0x38] sm:$0xff] }
 0x106   : > { %1485 = vmatprep.mubr.bf16.mxu0 %v2506_v11 }
 0x10d   : > { %1486 = vmatmul.mubr.bf16.gmra.mxu0 %v2508_v13 }
 0x10e   : > { %1495 = vmatprep.mubr.bf16.mxu0 %v2510_v14 }
 0x115   : > { %1496 = vmatmul.mubr.bf16.gmra.mxu0 %v2512_v15 }
 0x116   : > { %1505 = vmatprep.mubr.bf16.mxu0 %v2514_v16 }
 0x11d   : > { %1506 = vmatmul.mubr.bf16.gmra.mxu0 %v2516_v17  ;;  %v771_v17 = vld [vmem:[%s3094_s17 + $0x40] sm:$0xff] }
 0x148   : > { %v1550_v18 = vpop.f32.mrf.mxu1 }
 0x14a   : > { %v1552_v19 = vpop.f32.mrf.mxu1 }
 0x14c   : > { %v1554_v48 = vpop.f32.mrf.mxu1 }
 0x14e   : > { %v1556_v20 = vpop.f32.mrf.mxu1 }
 0x150   : > { %v1560_v21 = vpop.f32.mrf.mxu1 }
 0x152   : > { %v1562_v23 = vpop.f32.mrf.mxu1 }
 0x154   : > { %v3080_v24 = vpop.f32.mrf.mxu1 }
 0x156   : > { %v3084_v26 = vpop.f32.mrf.mxu1 }
 0x158   : > { %v3089_v27 = vpop.f32.mrf.mxu1 }
 0x15a   : > { %v3091_v29 = vpop.f32.mrf.mxu1 }
 0x15c   : > { %v3097_v33 = vpop.f32.mrf.mxu1 }
 0x15e   : > { %v3102_v38 = vpop.f32.mrf.mxu1 }
 0x160   : > { %v3107_v44 = vpop.f32.mrf.mxu1 }
 0x162   : > { %v3111_v51 = vpop.f32.mrf.mxu1 }
 0x164   : > { %v3115_v58 = vpop.f32.mrf.mxu1 }
 0x165   : > { %v1357_v34 = vpop.f32.mrf.mxu0 }
 0x166   : > { %v1358_v36 = vadd.f32 %v1357_v34, %v763_v30  ;;  %v3123_v1 = vpop.f32.mrf.mxu1 }
 0x167   : > { %v1359_v39 = vpop.f32.mrf.mxu0 }
 0x168   : > { %v1551_v41 = vadd.f32 %v1550_v18, %v1358_v36  ;;  %v1360_v42 = vadd.f32 %v1359_v39, %v764_v35  ;;  %v3128_v8 = vpop.f32.mrf.mxu1  ;;  %v773_v35 = vld [vmem:[%s3094_s17 + $0x50] sm:$0xff] }
 0x169   : > { %v1361_v45 = vpop.f32.mrf.mxu0 }
 0x16a   : > { %v1721_v47 = vadd.f32 %v3100_v37, %v1551_v41  ;;  %v1553_v49 = vadd.f32 %v1552_v19, %v1360_v42  ;;  %v1362_v50 = vadd.f32 %v1361_v45, %v765_v40  ;;  %v3133_v15 = vpop.f32.mrf.mxu1  ;;  %v774_v45 = vld [vmem:[%s3094_s17 + $0x58] sm:$0xff] }
 0x16b   : > { %v1363_v52 = vpop.f32.mrf.mxu0 }
 0x16c   : > { %v1785_v54 = vmax.f32 %v1721_v47, 0.0  ;;  %v1722_v55 = vadd.f32 %v3105_v43, %v1553_v49  ;;  %v1555_v56 = vadd.f32 %v1554_v48, %v1362_v50  ;;  %v1364_v57 = vadd.f32 %v1363_v52, %v766_v46 }
 0x16d   : > { %v1367_v59 = vpop.f32.mrf.mxu0 }
 0x16e   : > { %1849 = vst [vmem:[%s3119_s30] sm:$0xff] %v1785_v54  ;;  %v1786_v61 = vmax.f32 %v1722_v55, 0.0  ;;  %v1723_v62 = vadd.f32 %v3100_v37, %v1555_v56  ;;  %v1557_v63 = vadd.f32 %v1556_v20, %v1364_v57  ;;  %v1368_v0 = vadd.f32 %v1367_v59, %v767_v53  ;;  %v775_v53 = vld [vmem:[%s3094_s17 + $0x60] sm:$0xff] }
 0x16f   : > { %v1369_v2 = vpop.f32.mrf.mxu0 }
 0x170   : > { %1850 = vst [vmem:[%s3119_s30 + $0x8] sm:$0xff] %v1786_v61  ;;  %v1787_v4 = vmax.f32 %v1723_v62, 0.0  ;;  %v1724_v5 = vadd.f32 %v3105_v43, %v1557_v63  ;;  %v1561_v6 = vadd.f32 %v1560_v21, %v1368_v0  ;;  %v1370_v7 = vadd.f32 %v1369_v2, %v768_v60  ;;  %v3139_v21 = vpop.f32.mrf.mxu1  ;;  %v776_v60 = vld [vmem:[%s3094_s17 + $0x68] sm:$0xff] }
 0x171   : > { %v1371_v9 = vpop.f32.mrf.mxu0 }
 0x172   : > { %1851 = vst [vmem:[%s3119_s30 + $0x10] sm:$0xff] %v1787_v4  ;;  %v1788_v11 = vmax.f32 %v1724_v5, 0.0  ;;  %v1725_v12 = vadd.f32 %v3100_v37, %v1561_v6  ;;  %v1563_v13 = vadd.f32 %v1562_v23, %v1370_v7  ;;  %v1372_v14 = vadd.f32 %v1371_v9, %v769_v3  ;;  %v3145_v32 = vpop.f32.mrf.mxu1  ;;  %v777_v3 = vld [vmem:[%s3094_s17 + $0x70] sm:$0xff] }
 0x173   : > { %v1373_v16 = vpop.f32.mrf.mxu0 }
 0x174   : > { %1852 = vst [vmem:[%s3119_s30 + $0x18] sm:$0xff] %v1788_v11  ;;  %v1789_v18 = vmax.f32 %v1725_v12, 0.0  ;;  %v1726_v19 = vadd.f32 %v3105_v43, %v1563_v13  ;;  %v1565_v48 = vadd.f32 %v3080_v24, %v1372_v14  ;;  %v1374_v20 = vadd.f32 %v1373_v16, %v770_v10  ;;  %v3151_v41 = vpop.f32.mrf.mxu1  ;;  %v778_v10 = vld [vmem:[%s3094_s17 + $0x78] sm:$0xff] }
 0x175   : > { %v1377_v22 = vpop.f32.mrf.mxu0 }
 0x176   : > { %1853 = vst [vmem:[%s3119_s30 + $0x20] sm:$0xff] %v1789_v18  ;;  %v1790_v23 = vmax.f32 %v1726_v19, 0.0  ;;  %v1727_v28 = vadd.f32 %v3100_v37, %v1565_v48  ;;  %v1567_v30 = vadd.f32 %v3084_v26, %v1374_v20  ;;  %v1378_v31 = vadd.f32 %v1377_v22, %v771_v17  ;;  %v3157_v50 = vpop.f32.mrf.mxu1  ;;  %v779_v17 = vld [vmem:[%s3094_s17 + $0x80] sm:$0xff] }
 0x177   : > { %v1379_v34 = vpop.f32.mrf.mxu0 }
 0x178   : > { %1854 = vst [vmem:[%s3119_s30 + $0x28] sm:$0xff] %v1790_v23  ;;  %v1791_v24 = vmax.f32 %v1727_v28, 0.0  ;;  %v1728_v36 = vadd.f32 %v3105_v43, %v1567_v30  ;;  %v1571_v39 = vadd.f32 %v3089_v27, %v1378_v31  ;;  %v1380_v40 = vadd.f32 %v1379_v34, %v772_v25  ;;  %v3163_v57 = vpop.f32.mrf.mxu1  ;;  %v780_v25 = vld [vmem:[%s3094_s17 + $0x88] sm:$0xff] }
 0x179   : > { %v1381_v42 = vpop.f32.mrf.mxu0 }
 0x17a   : > { %1855 = vst [vmem:[%s3119_s30 + $0x30] sm:$0xff] %v1791_v24  ;;  %v1792_v26 = vmax.f32 %v1728_v36, 0.0  ;;  %v1729_v46 = vadd.f32 %v3100_v37, %v1571_v39  ;;  %v1573_v47 = vadd.f32 %v3091_v29, %v1380_v40  ;;  %v1382_v49 = vadd.f32 %v1381_v42, %v773_v35  ;;  %v3169_v0 = vpop.f32.mrf.mxu1  ;;  %v781_v35 = vld [vmem:[%s3094_s17 + $0x90] sm:$0xff] }
 0x17b   : > { %v1383_v52 = vpop.f32.mrf.mxu0 }
 0x17c   : > { %1856 = vst [vmem:[%s3119_s30 + $0x38] sm:$0xff] %v1792_v26  ;;  %v1793_v27 = vmax.f32 %v1729_v46, 0.0  ;;  %v1730_v54 = vadd.f32 %v3105_v43, %v1573_v47  ;;  %v1575_v55 = vadd.f32 %v3097_v33, %v1382_v49  ;;  %v1384_v56 = vadd.f32 %v1383_v52, %v774_v45  ;;  %v3175_v7 = vpop.f32.mrf.mxu1  ;;  %v782_v45 = vld [vmem:[%s3094_s17 + $0x98] sm:$0xff] }
 0x17d   : > { %v1387_v59 = vpop.f32.mrf.mxu0 }
 0x17e   : > { %1857 = vst [vmem:[%s3119_s30 + $0x40] sm:$0xff] %v1793_v27  ;;  %v1794_v29 = vmax.f32 %v1730_v54, 0.0  ;;  %v1731_v61 = vadd.f32 %v3100_v37, %v1575_v55  ;;  %v1577_v62 = vadd.f32 %v3102_v38, %v1384_v56  ;;  %v1388_v63 = vadd.f32 %v1387_v59, %v775_v53  ;;  %v3181_v14 = vpop.f32.mrf.mxu1  ;;  %v783_v53 = vld [vmem:[%s3094_s17 + $0xa0] sm:$0xff] }
 0x17f   : > { %v1389_v2 = vpop.f32.mrf.mxu0 }
 0x180   : > { %1858 = vst [vmem:[%s3119_s30 + $0x48] sm:$0xff] %v1794_v29  ;;  %v1795_v33 = vmax.f32 %v1731_v61, 0.0  ;;  %v1732_v4 = vadd.f32 %v3105_v43, %v1577_v62  ;;  %v1581_v5 = vadd.f32 %v3107_v44, %v1388_v63  ;;  %v1390_v6 = vadd.f32 %v1389_v2, %v776_v60  ;;  %v3187_v20 = vpop.f32.mrf.mxu1  ;;  %v784_v60 = vld [vmem:[%s3094_s17 + $0xa8] sm:$0xff] }
 0x181   : > { %v1391_v9 = vpop.f32.mrf.mxu0 }
 0x182   : > { %1859 = vst [vmem:[%s3119_s30 + $0x50] sm:$0xff] %v1795_v33  ;;  %v1796_v38 = vmax.f32 %v1732_v4, 0.0  ;;  %v1733_v11 = vadd.f32 %v3100_v37, %v1581_v5  ;;  %v1583_v12 = vadd.f32 %v3111_v51, %v1390_v6  ;;  %v1392_v13 = vadd.f32 %v1391_v9, %v777_v3  ;;  %v3193_v31 = vpop.f32.mrf.mxu1  ;;  %v785_v3 = vld [vmem:[%s3094_s17 + $0xb0] sm:$0xff] }
 0x183   : > { %v1393_v16 = vpop.f32.mrf.mxu0 }
 0x184   : > { %1860 = vst [vmem:[%s3119_s30 + $0x58] sm:$0xff] %v1796_v38  ;;  %v1797_v44 = vmax.f32 %v1733_v11, 0.0  ;;  %v1734_v18 = vadd.f32 %v3105_v43, %v1583_v12  ;;  %v1585_v19 = vadd.f32 %v3115_v58, %v1392_v13  ;;  %v1394_v48 = vadd.f32 %v1393_v16, %v778_v10  ;;  %v3199_v40 = vpop.f32.mrf.mxu1  ;;  %v786_v10 = vld [vmem:[%s3094_s17 + $0xb8] sm:$0xff] }
 0x185   : > { %v1397_v22 = vpop.f32.mrf.mxu0 }
 0x186   : > { %1861 = vst [vmem:[%s3119_s30 + $0x60] sm:$0xff] %v1797_v44  ;;  %v1798_v51 = vmax.f32 %v1734_v18, 0.0  ;;  %v1735_v23 = vadd.f32 %v3100_v37, %v1585_v19  ;;  %v1587_v28 = vadd.f32 %v3123_v1, %v1394_v48  ;;  %v1398_v30 = vadd.f32 %v1397_v22, %v779_v17  ;;  %v3205_v49 = vpop.f32.mrf.mxu1  ;;  %v787_v17 = vld [vmem:[%s3094_s17 + $0xc0] sm:$0xff] }
 0x187   : > { %v1399_v34 = vpop.f32.mrf.mxu0 }
 0x188   : > { %1862 = vst [vmem:[%s3119_s30 + $0x68] sm:$0xff] %v1798_v51  ;;  %v1799_v58 = vmax.f32 %v1735_v23, 0.0  ;;  %v1736_v24 = vadd.f32 %v3105_v43, %v1587_v28  ;;  %v1591_v36 = vadd.f32 %v3128_v8, %v1398_v30  ;;  %v1400_v39 = vadd.f32 %v1399_v34, %v780_v25  ;;  %v3211_v56 = vpop.f32.mrf.mxu1  ;;  %v788_v25 = vld [vmem:[%s3094_s17 + $0xc8] sm:$0xff] }
 0x189   : > { %v1401_v42 = vpop.f32.mrf.mxu0 }
 0x18a   : > { %1863 = vst [vmem:[%s3119_s30 + $0x70] sm:$0xff] %v1799_v58  ;;  %v1800_v1 = vmax.f32 %v1736_v24, 0.0  ;;  %v1737_v26 = vadd.f32 %v3100_v37, %v1591_v36  ;;  %v1593_v46 = vadd.f32 %v3133_v15, %v1400_v39  ;;  %v1402_v47 = vadd.f32 %v1401_v42, %v781_v35  ;;  %v3217_v63 = vpop.f32.mrf.mxu1  ;;  %v789_v35 = vld [vmem:[%s3094_s17 + $0xd0] sm:$0xff] }
 0x18b   : > { %v1403_v52 = vpop.f32.mrf.mxu0 }
 0x18c   : > { %1864 = vst [vmem:[%s3119_s30 + $0x78] sm:$0xff] %v1800_v1  ;;  %v1801_v8 = vmax.f32 %v1737_v26, 0.0  ;;  %v1738_v27 = vadd.f32 %v3105_v43, %v1593_v46  ;;  %v1595_v54 = vadd.f32 %v3139_v21, %v1402_v47  ;;  %v1404_v55 = vadd.f32 %v1403_v52, %v782_v45  ;;  %v3223_v6 = vpop.f32.mrf.mxu1  ;;  %v790_v45 = vld [vmem:[%s3094_s17 + $0xd8] sm:$0xff] }
 0x18d   : > { %v1407_v59 = vpop.f32.mrf.mxu0 }
 0x18e   : > { %1865 = vst [vmem:[%s3119_s30 + $0x80] sm:$0xff] %v1801_v8  ;;  %v1802_v15 = vmax.f32 %v1738_v27, 0.0  ;;  %v1739_v29 = vadd.f32 %v3100_v37, %v1595_v54  ;;  %v1597_v61 = vadd.f32 %v3145_v32, %v1404_v55  ;;  %v1408_v62 = vadd.f32 %v1407_v59, %v783_v53  ;;  %v3229_v13 = vpop.f32.mrf.mxu1  ;;  %v791_v53 = vld [vmem:[%s3094_s17 + $0xe0] sm:$0xff] }
 0x18f   : > { %v1409_v2 = vpop.f32.mrf.mxu0 }
 0x190   : > { %1866 = vst [vmem:[%s3119_s30 + $0x88] sm:$0xff] %v1802_v15  ;;  %v1803_v21 = vmax.f32 %v1739_v29, 0.0  ;;  %v1740_v33 = vadd.f32 %v3105_v43, %v1597_v61  ;;  %v1601_v4 = vadd.f32 %v3151_v41, %v1408_v62  ;;  %v1410_v5 = vadd.f32 %v1409_v2, %v784_v60  ;;  %v3235_v48 = vpop.f32.mrf.mxu1  ;;  %v792_v60 = vld [vmem:[%s3094_s17 + $0xe8] sm:$0xff] }
 0x191   : > { %v1411_v9 = vpop.f32.mrf.mxu0 }
 0x192   : > { %1867 = vst [vmem:[%s3119_s30 + $0x90] sm:$0xff] %v1803_v21  ;;  %v1804_v32 = vmax.f32 %v1740_v33, 0.0  ;;  %v1741_v38 = vadd.f32 %v3100_v37, %v1601_v4  ;;  %v1603_v11 = vadd.f32 %v3157_v50, %v1410_v5  ;;  %v1412_v12 = vadd.f32 %v1411_v9, %v785_v3  ;;  %v3241_v30 = vpop.f32.mrf.mxu1  ;;  %v793_v3 = vld [vmem:[%s3094_s17 + $0xf0] sm:$0xff] }
 0x193   : > { %v1413_v16 = vpop.f32.mrf.mxu0 }
 0x194   : > { %1868 = vst [vmem:[%s3119_s30 + $0x98] sm:$0xff] %v1804_v32  ;;  %v1805_v41 = vmax.f32 %v1741_v38, 0.0  ;;  %v1742_v44 = vadd.f32 %v3105_v43, %v1603_v11  ;;  %v1605_v18 = vadd.f32 %v3163_v57, %v1412_v12  ;;  %v1414_v19 = vadd.f32 %v1413_v16, %v786_v10  ;;  %v3247_v39 = vpop.f32.mrf.mxu1  ;;  %v794_v10 = vld [vmem:[%s3094_s17 + $0xf8] sm:$0xff] }
 0x195   : > { %v1417_v22 = vpop.f32.mrf.mxu0 }
 0x196   : > { %1869 = vst [vmem:[%s3119_s30 + $0xa0] sm:$0xff] %v1805_v41  ;;  %v1806_v50 = vmax.f32 %v1742_v44, 0.0  ;;  %v1743_v51 = vadd.f32 %v3100_v37, %v1605_v18  ;;  %v1607_v23 = vadd.f32 %v3169_v0, %v1414_v19  ;;  %v1418_v28 = vadd.f32 %v1417_v22, %v787_v17  ;;  %v3253_v47 = vpop.f32.mrf.mxu1  ;;  %v795_v17 = vld [vmem:[%s3094_s17 + $0x100] sm:$0xff] }
 0x197   : > { %v1419_v34 = vpop.f32.mrf.mxu0 }
 0x198   : > { %1870 = vst [vmem:[%s3119_s30 + $0xa8] sm:$0xff] %v1806_v50  ;;  %v1807_v57 = vmax.f32 %v1743_v51, 0.0  ;;  %v1744_v58 = vadd.f32 %v3105_v43, %v1607_v23  ;;  %v1611_v24 = vadd.f32 %v3175_v7, %v1418_v28  ;;  %v1420_v36 = vadd.f32 %v1419_v34, %v788_v25  ;;  %v3259_v55 = vpop.f32.mrf.mxu1  ;;  %v796_v25 = vld [vmem:[%s3094_s17 + $0x108] sm:$0xff] }
 0x199   : > { %v1421_v42 = vpop.f32.mrf.mxu0 }
 0x19a   : > { %1871 = vst [vmem:[%s3119_s30 + $0xb0] sm:$0xff] %v1807_v57  ;;  %v1808_v0 = vmax.f32 %v1744_v58, 0.0  ;;  %v1745_v1 = vadd.f32 %v3100_v37, %v1611_v24  ;;  %v1613_v26 = vadd.f32 %v3181_v14, %v1420_v36  ;;  %v1422_v46 = vadd.f32 %v1421_v42, %v789_v35  ;;  %v3265_v62 = vpop.f32.mrf.mxu1  ;;  %v797_v35 = vld [vmem:[%s3094_s17 + $0x110] sm:$0xff] }
 0x19b   : > { %v1423_v52 = vpop.f32.mrf.mxu0 }
 0x19c   : > { %1872 = vst [vmem:[%s3119_s30 + $0xb8] sm:$0xff] %v1808_v0  ;;  %v1809_v7 = vmax.f32 %v1745_v1, 0.0  ;;  %v1746_v8 = vadd.f32 %v3105_v43, %v1613_v26  ;;  %v1615_v27 = vadd.f32 %v3187_v20, %v1422_v46  ;;  %v1424_v54 = vadd.f32 %v1423_v52, %v790_v45  ;;  %v3271_v5 = vpop.f32.mrf.mxu1  ;;  %v798_v45 = vld [vmem:[%s3094_s17 + $0x118] sm:$0xff] }
 0x19d   : > { %v1427_v59 = vpop.f32.mrf.mxu0 }
 0x19e   : > { %1873 = vst [vmem:[%s3119_s30 + $0xc0] sm:$0xff] %v1809_v7  ;;  %v1810_v14 = vmax.f32 %v1746_v8, 0.0  ;;  %v1747_v15 = vadd.f32 %v3100_v37, %v1615_v27  ;;  %v1617_v29 = vadd.f32 %v3193_v31, %v1424_v54  ;;  %v1428_v61 = vadd.f32 %v1427_v59, %v791_v53  ;;  %v3277_v12 = vpop.f32.mrf.mxu1  ;;  %v799_v53 = vld [vmem:[%s3094_s17 + $0x120] sm:$0xff] }
 0x19f   : > { %v1429_v2 = vpop.f32.mrf.mxu0 }
 0x1a0   : > { %1874 = vst [vmem:[%s3119_s30 + $0xc8] sm:$0xff] %v1810_v14  ;;  %v1811_v20 = vmax.f32 %v1747_v15, 0.0  ;;  %v1748_v21 = vadd.f32 %v3105_v43, %v1617_v29  ;;  %v1621_v33 = vadd.f32 %v3199_v40, %v1428_v61  ;;  %v1430_v4 = vadd.f32 %v1429_v2, %v792_v60  ;;  %v3283_v19 = vpop.f32.mrf.mxu1  ;;  %v800_v60 = vld [vmem:[%s3094_s17 + $0x128] sm:$0xff] }
 0x1a1   : > { %v1431_v9 = vpop.f32.mrf.mxu0 }
 0x1a2   : > { %1875 = vst [vmem:[%s3119_s30 + $0xd0] sm:$0xff] %v1811_v20  ;;  %v1812_v31 = vmax.f32 %v1748_v21, 0.0  ;;  %v1749_v32 = vadd.f32 %v3100_v37, %v1621_v33  ;;  %v1623_v38 = vadd.f32 %v3205_v49, %v1430_v4  ;;  %v1432_v11 = vadd.f32 %v1431_v9, %v793_v3  ;;  %v3289_v28 = vpop.f32.mrf.mxu1  ;;  %v801_v3 = vld [vmem:[%s3094_s17 + $0x130] sm:$0xff] }
 0x1a3   : > { %v1433_v16 = vpop.f32.mrf.mxu0 }
 0x1a4   : > { %1876 = vst [vmem:[%s3119_s30 + $0xd8] sm:$0xff] %v1812_v31  ;;  %v1813_v40 = vmax.f32 %v1749_v32, 0.0  ;;  %v1750_v41 = vadd.f32 %v3105_v43, %v1623_v38  ;;  %v1625_v44 = vadd.f32 %v3211_v56, %v1432_v11  ;;  %v1434_v18 = vadd.f32 %v1433_v16, %v794_v10  ;;  %v3295_v36 = vpop.f32.mrf.mxu1  ;;  %v802_v10 = vld [vmem:[%s3094_s17 + $0x138] sm:$0xff] }
 0x1a5   : > { %v1437_v22 = vpop.f32.mrf.mxu0 }
 0x1a6   : > { %1877 = vst [vmem:[%s3119_s30 + $0xe0] sm:$0xff] %v1813_v40  ;;  %v1814_v49 = vmax.f32 %v1750_v41, 0.0  ;;  %v1751_v50 = vadd.f32 %v3100_v37, %v1625_v44  ;;  %v1627_v51 = vadd.f32 %v3217_v63, %v1434_v18  ;;  %v1438_v23 = vadd.f32 %v1437_v22, %v795_v17  ;;  %v3301_v46 = vpop.f32.mrf.mxu1  ;;  %v803_v17 = vld [vmem:[%s3094_s17 + $0x140] sm:$0xff] }
 0x1a7   : > { %v1439_v34 = vpop.f32.mrf.mxu0 }
 0x1a8   : > { %1878 = vst [vmem:[%s3119_s30 + $0xe8] sm:$0xff] %v1814_v49  ;;  %v1815_v56 = vmax.f32 %v1751_v50, 0.0  ;;  %v1752_v57 = vadd.f32 %v3105_v43, %v1627_v51  ;;  %v1631_v58 = vadd.f32 %v3223_v6, %v1438_v23  ;;  %v1440_v24 = vadd.f32 %v1439_v34, %v796_v25  ;;  %v3307_v54 = vpop.f32.mrf.mxu1  ;;  %v804_v25 = vld [vmem:[%s3094_s17 + $0x148] sm:$0xff] }
 0x1a9   : > { %v1441_v42 = vpop.f32.mrf.mxu0 }
 0x1aa   : > { %1879 = vst [vmem:[%s3119_s30 + $0xf0] sm:$0xff] %v1815_v56  ;;  %v1816_v63 = vmax.f32 %v1752_v57, 0.0  ;;  %v1753_v0 = vadd.f32 %v3100_v37, %v1631_v58  ;;  %v1633_v1 = vadd.f32 %v3229_v13, %v1440_v24  ;;  %v1442_v26 = vadd.f32 %v1441_v42, %v797_v35  ;;  %v3313_v61 = vpop.f32.mrf.mxu1  ;;  %v805_v35 = vld [vmem:[%s3094_s17 + $0x150] sm:$0xff]  ;;  %v806_v42 = vld [vmem:[%s3094_s17 + $0x158] sm:$0xff] }
 0x1ab   : > { %v1443_v52 = vpop.f32.mrf.mxu0 }
 0x1ac   : > { %1880 = vst [vmem:[%s3119_s30 + $0xf8] sm:$0xff] %v1816_v63  ;;  %v1817_v6 = vmax.f32 %v1753_v0, 0.0  ;;  %v1754_v7 = vadd.f32 %v3105_v43, %v1633_v1  ;;  %v1635_v8 = vadd.f32 %v3235_v48, %v1442_v26  ;;  %v1444_v27 = vadd.f32 %v1443_v52, %v798_v45  ;;  %v3319_v4 = vpop.f32.mrf.mxu1  ;;  %v807_v52 = vld [vmem:[%s3094_s17 + $0x160] sm:$0xff] }
 0x1ad   : > { %v1447_v59 = vpop.f32.mrf.mxu0 }
 0x1ae   : > { %1881 = vst [vmem:[%s3119_s30 + $0x100] sm:$0xff] %v1817_v6  ;;  %v1818_v13 = vmax.f32 %v1754_v7, 0.0  ;;  %v1755_v14 = vadd.f32 %v3100_v37, %v1635_v8  ;;  %v1637_v15 = vadd.f32 %v3241_v30, %v1444_v27  ;;  %v1448_v29 = vadd.f32 %v1447_v59, %v799_v53  ;;  %v3325_v11 = vpop.f32.mrf.mxu1  ;;  %v808_v27 = vld [vmem:[%s3094_s17 + $0x168] sm:$0xff] }
 0x1af   : > { %v1449_v2 = vpop.f32.mrf.mxu0 }
 0x1b0   : > { %1882 = vst [vmem:[%s3119_s30 + $0x108] sm:$0xff] %v1818_v13  ;;  %v1819_v48 = vmax.f32 %v1755_v14, 0.0  ;;  %v1756_v20 = vadd.f32 %v3105_v43, %v1637_v15  ;;  %v1641_v21 = vadd.f32 %v3247_v39, %v1448_v29  ;;  %v1450_v33 = vadd.f32 %v1449_v2, %v800_v60  ;;  %v3331_v18 = vpop.f32.mrf.mxu1  ;;  %v809_v29 = vld [vmem:[%s3094_s17 + $0x170] sm:$0xff] }
 0x1b1   : > { %v1451_v9 = vpop.f32.mrf.mxu0 }
 0x1b2   : > { %1883 = vst [vmem:[%s3119_s30 + $0x110] sm:$0xff] %v1819_v48  ;;  %v1820_v30 = vmax.f32 %v1756_v20, 0.0  ;;  %v1757_v31 = vadd.f32 %v3100_v37, %v1641_v21  ;;  %v1643_v32 = vadd.f32 %v3253_v47, %v1450_v33  ;;  %v1452_v38 = vadd.f32 %v1451_v9, %v801_v3  ;;  %v3337_v23 = vpop.f32.mrf.mxu1  ;;  %v810_v21 = vld [vmem:[%s3094_s17 + $0x178] sm:$0xff] }
 0x1b3   : > { %v1453_v16 = vpop.f32.mrf.mxu0 }
 0x1b4   : > { %1884 = vst [vmem:[%s3119_s30 + $0x118] sm:$0xff] %v1820_v30  ;;  %v1821_v39 = vmax.f32 %v1757_v31, 0.0  ;;  %v1758_v40 = vadd.f32 %v3105_v43, %v1643_v32  ;;  %v1645_v41 = vadd.f32 %v3259_v55, %v1452_v38  ;;  %v1454_v44 = vadd.f32 %v1453_v16, %v802_v10  ;;  %v3344_v45 = vpop.f32.mrf.mxu1  ;;  %v811_v32 = vld [vmem:[%s3094_s17 + $0x180] sm:$0xff] }
 0x1b5   : > { %v1457_v22 = vpop.f32.mrf.mxu0 }
 0x1b6   : > { %1885 = vst [vmem:[%s3119_s30 + $0x120] sm:$0xff] %v1821_v39  ;;  %v1822_v47 = vmax.f32 %v1758_v40, 0.0  ;;  %v1759_v49 = vadd.f32 %v3100_v37, %v1645_v41  ;;  %v1647_v50 = vadd.f32 %v3265_v62, %v1454_v44  ;;  %v1458_v51 = vadd.f32 %v1457_v22, %v803_v17  ;;  %v3354_v59 = vpop.f32.mrf.mxu1  ;;  %v812_v40 = vld [vmem:[%s3094_s17 + $0x188] sm:$0xff] }
 0x1b7   : > { %v1459_v34 = vpop.f32.mrf.mxu0 }
 0x1b8   : > { %1886 = vst [vmem:[%s3119_s30 + $0x128] sm:$0xff] %v1822_v47  ;;  %v1823_v55 = vmax.f32 %v1759_v49, 0.0  ;;  %v1760_v56 = vadd.f32 %v3105_v43, %v1647_v50  ;;  %v1651_v57 = vadd.f32 %v3271_v5, %v1458_v51  ;;  %v1460_v58 = vadd.f32 %v1459_v34, %v804_v25  ;;  %v3364_v33 = vpop.f32.mrf.mxu1  ;;  %v813_v49 = vld [vmem:[%s3094_s17 + $0x190] sm:$0xff] }
 0x1b9   : > { %v1461_v24 = vpop.f32.mrf.mxu0 }
 0x1ba   : > { %1887 = vst [vmem:[%s3119_s30 + $0x130] sm:$0xff] %v1823_v55  ;;  %v1824_v62 = vmax.f32 %v1760_v56, 0.0  ;;  %v1761_v63 = vadd.f32 %v3100_v37, %v1651_v57  ;;  %v1653_v0 = vadd.f32 %v3277_v12, %v1460_v58  ;;  %v1462_v1 = vadd.f32 %v1461_v24, %v805_v35  ;;  %v3374_v41 = vpop.f32.mrf.mxu1  ;;  %v814_v55 = vld [vmem:[%s3094_s17 + $0x198] sm:$0xff] }
 0x1bb   : > { %v1463_v26 = vpop.f32.mrf.mxu0 }
 0x1bc   : > { %1888 = vst [vmem:[%s3119_s30 + $0x138] sm:$0xff] %v1824_v62  ;;  %v1825_v5 = vmax.f32 %v1761_v63, 0.0  ;;  %v1762_v53 = vadd.f32 %v3105_v43, %v1653_v0  ;;  %v1655_v6 = vadd.f32 %v3283_v19, %v1462_v1  ;;  %v1464_v7 = vadd.f32 %v1463_v26, %v806_v42  ;;  %v1690_v56 = vpop.f32.mrf.mxu1  ;;  %v815_v62 = vld [vmem:[%s3094_s17 + $0x1a0] sm:$0xff] }
 0x1bd   : > { %v1467_v8 = vpop.f32.mrf.mxu0 }
 0x1be   : > { %1889 = vst [vmem:[%s3119_s30 + $0x140] sm:$0xff] %v1825_v5  ;;  %v1826_v12 = vmax.f32 %v1762_v53, 0.0  ;;  %v1763_v60 = vadd.f32 %v3100_v37, %v1655_v6  ;;  %v1657_v13 = vadd.f32 %v3289_v28, %v1464_v7  ;;  %v1468_v14 = vadd.f32 %v1467_v8, %v807_v52  ;;  %v816_v52 = vld [vmem:[%s3094_s17 + $0x1a8] sm:$0xff]  ;;  %v1692_v5 = vpop.f32.mrf.mxu1 }
 0x1bf   : > { %v1469_v15 = vpop.f32.mrf.mxu0 }
 0x1c0   : > { %1890 = vst [vmem:[%s3119_s30 + $0x148] sm:$0xff] %v1826_v12  ;;  %v1827_v19 = vmax.f32 %v1763_v60, 0.0  ;;  %v1764_v2 = vadd.f32 %v3105_v43, %v1657_v13  ;;  %v1661_v3 = vadd.f32 %v3295_v36, %v1468_v14  ;;  %v1470_v48 = vadd.f32 %v1469_v15, %v808_v27  ;;  %v817_v27 = vld [vmem:[%s3094_s17 + $0x1b0] sm:$0xff]  ;;  %v818_v15 = vld [vmem:[%s3094_s17 + $0x1b8] sm:$0xff] }
 0x1c1   : > { %v1471_v20 = vpop.f32.mrf.mxu0 }
 0x1c2   : > { %1891 = vst [vmem:[%s3119_s30 + $0x150] sm:$0xff] %v1827_v19  ;;  %v1828_v28 = vmax.f32 %v1764_v2, 0.0  ;;  %v1765_v9 = vadd.f32 %v3100_v37, %v1661_v3  ;;  %v1663_v10 = vadd.f32 %v3301_v46, %v1470_v48  ;;  %v1472_v30 = vadd.f32 %v1471_v20, %v809_v29  ;;  %v1694_v29 = vpop.f32.mrf.mxu1  ;;  %v819_v20 = vld [vmem:[%s3094_s17 + $0x1c0] sm:$0xff] }
 0x1c3   : > { %v1473_v31 = vpop.f32.mrf.mxu0 }
 0x1c4   : > { %1892 = vst [vmem:[%s3119_s30 + $0x158] sm:$0xff] %v1828_v28  ;;  %v1829_v36 = vmax.f32 %v1765_v9, 0.0  ;;  %v1766_v38 = vadd.f32 %v3105_v43, %v1663_v10  ;;  %v1665_v16 = vadd.f32 %v3307_v54, %v1472_v30  ;;  %v1474_v17 = vadd.f32 %v1473_v31, %v810_v21  ;;  %v820_v30 = vld [vmem:[%s3094_s17 + $0x1c8] sm:$0xff]  ;;  %v1696_v31 = vpop.f32.mrf.mxu1 }
 0x1c5   : > { %v1477_v39 = vpop.f32.mrf.mxu0 }
 0x1c6   : > { %1893 = vst [vmem:[%s3119_s30 + $0x160] sm:$0xff] %v1829_v36  ;;  %v1830_v46 = vmax.f32 %v1766_v38, 0.0  ;;  %v1767_v44 = vadd.f32 %v3100_v37, %v1665_v16  ;;  %v1667_v22 = vadd.f32 %v3313_v61, %v1474_v17  ;;  %v1478_v25 = vadd.f32 %v1477_v39, %v811_v32  ;;  %v821_v17 = vld [vmem:[%s3094_s17 + $0x1d0] sm:$0xff] }
 0x1c7   : > { %v1479_v47 = vpop.f32.mrf.mxu0 }
 0x1c8   : > { %1894 = vst [vmem:[%s3119_s30 + $0x168] sm:$0xff] %v1830_v46  ;;  %v1831_v54 = vmax.f32 %v1767_v44, 0.0  ;;  %v1768_v50 = vadd.f32 %v3105_v43, %v1667_v22  ;;  %v1671_v51 = vadd.f32 %v3319_v4, %v1478_v25  ;;  %v1480_v34 = vadd.f32 %v1479_v47, %v812_v40  ;;  %v1700_v22 = vpop.f32.mrf.mxu1  ;;  %v822_v25 = vld [vmem:[%s3094_s17 + $0x1d8] sm:$0xff] }
 0x1c9   : > { %v1481_v35 = vpop.f32.mrf.mxu0 }
 0x1ca   : > { %1895 = vst [vmem:[%s3119_s30 + $0x170] sm:$0xff] %v1831_v54  ;;  %v1832_v57 = vmax.f32 %v1768_v50, 0.0  ;;  %v1769_v61 = vadd.f32 %v3100_v37, %v1671_v51  ;;  %v1673_v58 = vadd.f32 %v3325_v11, %v1480_v34  ;;  %v1482_v24 = vadd.f32 %v1481_v35, %v813_v49  ;;  %v823_v51 = vld [vmem:[%s3094_s17 + $0x1e0] sm:$0xff] }
 0x1cb   : > { %v1483_v42 = vpop.f32.mrf.mxu0 }
 0x1cc   : > { %1896 = vst [vmem:[%s3119_s30 + $0x178] sm:$0xff] %v1832_v57  ;;  %v1833_v63 = vmax.f32 %v1769_v61, 0.0  ;;  %v1770_v4 = vadd.f32 %v3105_v43, %v1673_v58  ;;  %v1675_v0 = vadd.f32 %v3331_v18, %v1482_v24  ;;  %v1484_v1 = vadd.f32 %v1483_v42, %v814_v55  ;;  %v1702_v57 = vpop.f32.mrf.mxu1  ;;  %v824_v58 = vld [vmem:[%s3094_s17 + $0x1e8] sm:$0xff] }
 0x1cd   : > { %v1487_v26 = vpop.f32.mrf.mxu0 }
 0x1ce   : > { %1897 = vst [vmem:[%s3119_s30 + $0x180] sm:$0xff] %v1833_v63  ;;  %v1834_v53 = vmax.f32 %v1770_v4, 0.0  ;;  %v1771_v11 = vadd.f32 %v3100_v37, %v1675_v0  ;;  %v1677_v6 = vadd.f32 %v3337_v23, %v1484_v1  ;;  %v1488_v7 = vadd.f32 %v1487_v26, %v815_v62  ;;  %v825_v0 = vld [vmem:[%s3094_s17 + $0x1f0] sm:$0xff] }
 0x1cf   : > { %v1489_v8 = vpop.f32.mrf.mxu0 }
 0x1d0   : > { %1898 = vst [vmem:[%s3119_s30 + $0x188] sm:$0xff] %v1834_v53  ;;  %v1835_v12 = vmax.f32 %v1771_v11, 0.0  ;;  %v1772_v18 = vadd.f32 %v3105_v43, %v1677_v6  ;;  %v1681_v60 = vadd.f32 %v3344_v45, %v1488_v7  ;;  %v1490_v13 = vadd.f32 %v1489_v8, %v816_v52  ;;  %v1704_v53 = vpop.f32.mrf.mxu1  ;;  %v826_v6 = vld [vmem:[%s3094_s17 + $0x1f8] sm:$0xff] }
 0x1d1   : > { %v1491_v14 = vpop.f32.mrf.mxu0 }
 0x1d2   : > { %1899 = vst [vmem:[%s3119_s30 + $0x190] sm:$0xff] %v1835_v12  ;;  %v1836_v19 = vmax.f32 %v1772_v18, 0.0  ;;  %v1773_v23 = vadd.f32 %v3100_v37, %v1681_v60  ;;  %v1683_v2 = vadd.f32 %v3354_v59, %v1490_v13  ;;  %v1492_v3 = vadd.f32 %v1491_v14, %v817_v27 }
 0x1d3   : > { %v1493_v48 = vpop.f32.mrf.mxu0 }
 0x1d4   : > { %1900 = vst [vmem:[%s3119_s30 + $0x198] sm:$0xff] %v1836_v19  ;;  %v1837_v21 = vmax.f32 %v1773_v23, 0.0  ;;  %v1774_v45 = vadd.f32 %v3105_v43, %v1683_v2  ;;  %v1685_v28 = vadd.f32 %v3364_v33, %v1492_v3  ;;  %v1494_v9 = vadd.f32 %v1493_v48, %v818_v15 }
 0x1d5   : > { %v1497_v10 = vpop.f32.mrf.mxu0 }
 0x1d6   : > { %1901 = vst [vmem:[%s3119_s30 + $0x1a0] sm:$0xff] %v1837_v21  ;;  %v1838_v32 = vmax.f32 %v1774_v45, 0.0  ;;  %v1775_v59 = vadd.f32 %v3100_v37, %v1685_v28  ;;  %v1687_v36 = vadd.f32 %v3374_v41, %v1494_v9  ;;  %v1498_v38 = vadd.f32 %v1497_v10, %v819_v20  ;;  %v1942_v21 = vld [vmem:[%s3119_s30 + $0x10] sm:$0xff] (%p2696_p10)  ;;  %v1944_v45 = vld [vmem:[%s3119_s30 + $0x18] sm:$0xff] (%p2696_p10)  ;;  %v1946_v28 = vld [vmem:[%s3119_s30 + $0x20] sm:$0xff] (%p2696_p10) }
 0x1d7   : > { %v1499_v16 = vpop.f32.mrf.mxu0  ;;  %v1948_v9 = vld [vmem:[%s3119_s30 + $0x28] sm:$0xff] (%p2696_p10)  ;;  %v1950_v10 = vld [vmem:[%s3119_s30 + $0x30] sm:$0xff] (%p2696_p10)  ;;  %1943 = vst [vmem:[%s3453_s7 + $0x20] sm:$0xff] (%p2696_p10), %v1942_v21  ;;  %1945 = vst [vmem:[%s3453_s7 + $0x28] sm:$0xff] (%p2696_p10), %v1944_v45 }
 0x1d8   : > { %1902 = vst [vmem:[%s3119_s30 + $0x1a8] sm:$0xff] %v1838_v32  ;;  %v1839_v39 = vmax.f32 %v1775_v59, 0.0  ;;  %v1776_v33 = vadd.f32 %v3105_v43, %v1687_v36  ;;  %v1691_v40 = vadd.f32 %v1690_v56, %v1498_v38  ;;  %v1500_v46 = vadd.f32 %v1499_v16, %v820_v30  ;;  %v1952_v30 = vld [vmem:[%s3119_s30 + $0x38] sm:$0xff] (%p2696_p10)  ;;  %v1956_v32 = vld [vmem:[%s3119_s30 + $0x48] sm:$0xff] (%p2696_p10)  ;;  %v1958_v59 = vld [vmem:[%s3119_s30 + $0x50] sm:$0xff] (%p2696_p10) }
 0x1d9   : > { %v1501_v44 = vpop.f32.mrf.mxu0  ;;  %v1960_v36 = vld [vmem:[%s3119_s30 + $0x58] sm:$0xff] (%p2696_p10)  ;;  %1947 = vst [vmem:[%s3453_s7 + $0x40] sm:$0xff] (%p2696_p10), %v1946_v28  ;;  %1949 = vst [vmem:[%s3453_s7 + $0x48] sm:$0xff] (%p2696_p10), %v1948_v9  ;;  %v1962_v38 = vld [vmem:[%s3119_s30 + $0x60] sm:$0xff] (%p2696_p10) }
 0x1da   : > { %1903 = vst [vmem:[%s3119_s30 + $0x1b0] sm:$0xff] %v1839_v39  ;;  %v1840_v47 = vmax.f32 %v1776_v33, 0.0  ;;  %v1777_v41 = vadd.f32 %v3100_v37, %v1691_v40  ;;  %v1693_v49 = vadd.f32 %v1692_v5, %v1500_v46  ;;  %v1502_v54 = vadd.f32 %v1501_v44, %v821_v17  ;;  %1951 = vst [vmem:[%s3453_s7 + $0x60] sm:$0xff] (%p2696_p10), %v1950_v10  ;;  %v1964_v16 = vld [vmem:[%s3119_s30 + $0x68] sm:$0xff] (%p2696_p10)  ;;  %v1966_v17 = vld [vmem:[%s3119_s30 + $0x70] sm:$0xff] (%p2696_p10) }
 0x1db   : > { %v1503_v50 = vpop.f32.mrf.mxu0  ;;  %1953 = vst [vmem:[%s3453_s7 + $0x68] sm:$0xff] (%p2696_p10), %v1952_v30  ;;  %1957 = vst [vmem:[%s3453_s7 + $0x88] sm:$0xff] (%p2696_p10), %v1956_v32  ;;  %v1968_v39 = vld [vmem:[%s3119_s30 + $0x78] sm:$0xff] (%p2696_p10)  ;;  %v1970_v33 = vld [vmem:[%s3119_s30 + $0x80] sm:$0xff] (%p2696_p10) }
 0x1dc   : > { %1904 = vst [vmem:[%s3119_s30 + $0x1b8] sm:$0xff] %v1840_v47  ;;  %v1841_v34 = vmax.f32 %v1777_v41, 0.0  ;;  %v1778_v35 = vadd.f32 %v3105_v43, %v1693_v49  ;;  %v1695_v55 = vadd.f32 %v1694_v29, %v1502_v54  ;;  %v1504_v56 = vadd.f32 %v1503_v50, %v822_v25  ;;  %v1706_v29 = vpop.f32.mrf.mxu1  ;;  %1959 = vst [vmem:[%s3453_s7 + $0xa0] sm:$0xff] (%p2696_p10), %v1958_v59  ;;  %v1972_v40 = vld [vmem:[%s3119_s30 + $0x88] sm:$0xff] (%p2696_p10)  ;;  %v1974_v46 = vld [vmem:[%s3119_s30 + $0x90] sm:$0xff] (%p2696_p10) }
 0x1dd   : > { %v1507_v61 = vpop.f32.mrf.mxu0  ;;  %1961 = vst [vmem:[%s3453_s7 + $0xa8] sm:$0xff] (%p2696_p10), %v1960_v36  ;;  %1963 = vst [vmem:[%s3453_s7 + $0xc0] sm:$0xff] (%p2696_p10), %v1962_v38  ;;  %v1976_v44 = vld [vmem:[%s3119_s30 + $0x98] sm:$0xff] (%p2696_p10)  ;;  %v1980_v25 = vld [vmem:[%s3119_s30 + $0xa8] sm:$0xff] (%p2696_p10) }
 0x1de   : > { %1905 = vst [vmem:[%s3119_s30 + $0x1c0] sm:$0xff] %v1841_v34  ;;  %v1842_v24 = vmax.f32 %v1778_v35, 0.0  ;;  %v1779_v42 = vadd.f32 %v3100_v37, %v1695_v55  ;;  %v1697_v62 = vadd.f32 %v1696_v31, %v1504_v56  ;;  %v1508_v63 = vadd.f32 %v1507_v61, %v823_v51  ;;  %v1954_v31 = vld [vmem:[%s3119_s30 + $0x40] sm:$0xff] (%p2696_p10)  ;;  %1965 = vst [vmem:[%s3453_s7 + $0xc8] sm:$0xff] (%p2696_p10), %v1964_v16  ;;  %v1982_v47 = vld [vmem:[%s3119_s30 + $0xb0] sm:$0xff] (%p2696_p10) }
 0x1df   : > { %v1509_v4 = vpop.f32.mrf.mxu0  ;;  %1955 = vst [vmem:[%s3453_s7 + $0x80] sm:$0xff] (%p2696_p10), %v1954_v31  ;;  %1967 = vst [vmem:[%s3453_s7 + $0xe0] sm:$0xff] (%p2696_p10), %v1966_v17  ;;  %v1984_v41 = vld [vmem:[%s3119_s30 + $0xb8] sm:$0xff] (%p2696_p10)  ;;  %v1986_v49 = vld [vmem:[%s3119_s30 + $0xc0] sm:$0xff] (%p2696_p10) }
 0x1e0   : > { %1906 = vst [vmem:[%s3119_s30 + $0x1c8] sm:$0xff] %v1842_v24  ;;  %v1843_v1 = vmax.f32 %v1779_v42, 0.0  ;;  %v1780_v26 = vadd.f32 %v3105_v43, %v1697_v62  ;;  %v1701_v52 = vadd.f32 %v1700_v22, %v1508_v63  ;;  %v1510_v5 = vadd.f32 %v1509_v4, %v824_v58  ;;  %1969 = vst [vmem:[%s3453_s7 + $0xe8] sm:$0xff] (%p2696_p10), %v1968_v39  ;;  %v1978_v22 = vld [vmem:[%s3119_s30 + $0xa0] sm:$0xff] (%p2696_p10)  ;;  %v1988_v54 = vld [vmem:[%s3119_s30 + $0xc8] sm:$0xff] (%p2696_p10) }
 0x1e1   : > { %v1511_v11 = vpop.f32.mrf.mxu0  ;;  %1971 = vst [vmem:[%s3453_s7 + $0x100] sm:$0xff] (%p2696_p10), %v1970_v33  ;;  %1973 = vst [vmem:[%s3453_s7 + $0x108] sm:$0xff] (%p2696_p10), %v1972_v40  ;;  %v1990_v50 = vld [vmem:[%s3119_s30 + $0xd0] sm:$0xff] (%p2696_p10)  ;;  %v1992_v51 = vld [vmem:[%s3119_s30 + $0xd8] sm:$0xff] (%p2696_p10) }
 0x1e2   : > { %1907 = vst [vmem:[%s3119_s30 + $0x1d0] sm:$0xff] %v1843_v1  ;;  %v1844_v7 = vmax.f32 %v1780_v26, 0.0  ;;  %v1781_v8 = vadd.f32 %v3100_v37, %v1701_v52  ;;  %v1703_v27 = vadd.f32 %v1702_v57, %v1510_v5  ;;  %v1512_v12 = vadd.f32 %v1511_v11, %v825_v0  ;;  %1975 = vst [vmem:[%s3453_s7 + $0x120] sm:$0xff] (%p2696_p10), %v1974_v46  ;;  %v1994_v34 = vld [vmem:[%s3119_s30 + $0xe0] sm:$0xff] (%p2696_p10)  ;;  %v1996_v35 = vld [vmem:[%s3119_s30 + $0xe8] sm:$0xff] (%p2696_p10) }
 0x1e3   : > { %v1513_v18 = vpop.f32.mrf.mxu0  ;;  %1977 = vst [vmem:[%s3453_s7 + $0x128] sm:$0xff] (%p2696_p10), %v1976_v44  ;;  %1979 = vst [vmem:[%s3453_s7 + $0x140] sm:$0xff] (%p2696_p10), %v1978_v22  ;;  %v1998_v55 = vld [vmem:[%s3119_s30 + $0xf0] sm:$0xff] (%p2696_p10)  ;;  %v2000_v56 = vld [vmem:[%s3119_s30 + $0xf8] sm:$0xff] (%p2696_p10) }
 0x1e4   : > { %1908 = vst [vmem:[%s3119_s30 + $0x1d8] sm:$0xff] %v1844_v7  ;;  %v1845_v60 = vmax.f32 %v1781_v8, 0.0  ;;  %v1782_v13 = vadd.f32 %v3105_v43, %v1703_v27  ;;  %v1705_v14 = vadd.f32 %v1704_v53, %v1512_v12  ;;  %v1514_v15 = vadd.f32 %v1513_v18, %v826_v6  ;;  %1981 = vst [vmem:[%s3453_s7 + $0x148] sm:$0xff] (%p2696_p10), %v1980_v25  ;;  %v2002_v57 = vld [vmem:[%s3119_s30 + $0x100] sm:$0xff] (%p2696_p10)  ;;  %v2004_v61 = vld [vmem:[%s3119_s30 + $0x108] sm:$0xff] (%p2696_p10) }
 0x1e5   : > { %1983 = vst [vmem:[%s3453_s7 + $0x160] sm:$0xff] (%p2696_p10), %v1982_v47  ;;  %1985 = vst [vmem:[%s3453_s7 + $0x168] sm:$0xff] (%p2696_p10), %v1984_v41  ;;  %v2006_v58 = vld [vmem:[%s3119_s30 + $0x110] sm:$0xff] (%p2696_p10)  ;;  %v2008_v24 = vld [vmem:[%s3119_s30 + $0x118] sm:$0xff] (%p2696_p10) }
 0x1e6   : > { %1909 = vst [vmem:[%s3119_s30 + $0x1e0] sm:$0xff] %v1845_v60  ;;  %v1846_v19 = vmax.f32 %v1782_v13, 0.0  ;;  %v1783_v23 = vadd.f32 %v3100_v37, %v1705_v14  ;;  %v1707_v2 = vadd.f32 %v1706_v29, %v1514_v15  ;;  %v1938_v37 = vld [vmem:[%s3119_s30] sm:$0xff] (%p2696_p10)  ;;  %1987 = vst [vmem:[%s3453_s7 + $0x180] sm:$0xff] (%p2696_p10), %v1986_v49  ;;  %v2012_v62 = vld [vmem:[%s3119_s30 + $0x128] sm:$0xff] (%p2696_p10) }
 0x1e7   : > { %1939 = vst [vmem:[%s3453_s7] sm:$0xff] (%p2696_p10), %v1938_v37  ;;  %1989 = vst [vmem:[%s3453_s7 + $0x188] sm:$0xff] (%p2696_p10), %v1988_v54  ;;  %v2010_v42 = vld [vmem:[%s3119_s30 + $0x120] sm:$0xff] (%p2696_p10)  ;;  %v2014_v63 = vld [vmem:[%s3119_s30 + $0x130] sm:$0xff] (%p2696_p10) }
 0x1e8   : > { %1910 = vst [vmem:[%s3119_s30 + $0x1e8] sm:$0xff] %v1846_v19  ;;  %v1847_v3 = vmax.f32 %v1783_v23, 0.0  ;;  %v1784_v48 = vadd.f32 %v3105_v43, %v1707_v2  ;;  %1919 = sbr.rel (!%p2696_p10) target bundleno = 509 (0x1fd), region = 101  ;;  %v1940_v43 = vld [vmem:[%s3119_s30 + $0x8] sm:$0xff] (%p2696_p10)  ;;  %1991 = vst [vmem:[%s3453_s7 + $0x1a0] sm:$0xff] (%p2696_p10), %v1990_v50  ;;  %v2016_v4 = vld [vmem:[%s3119_s30 + $0x138] sm:$0xff] (%p2696_p10) }
 0x1e9   : > { %1941 = vst [vmem:[%s3453_s7 + $0x8] sm:$0xff] (%p2696_p10), %v1940_v43  ;;  %1993 = vst [vmem:[%s3453_s7 + $0x1a8] sm:$0xff] (%p2696_p10), %v1992_v51  ;;  %v2018_v0 = vld [vmem:[%s3119_s30 + $0x140] sm:$0xff] (%p2696_p10)  ;;  %v2020_v1 = vld [vmem:[%s3119_s30 + $0x148] sm:$0xff] (%p2696_p10) }
 0x1ea   : > { %1911 = vst [vmem:[%s3119_s30 + $0x1f0] sm:$0xff] %v1847_v3  ;;  %v1848_v20 = vmax.f32 %v1784_v48, 0.0  ;;  %1995 = vst [vmem:[%s3453_s7 + $0x1c0] sm:$0xff] (%p2696_p10), %v1994_v34  ;;  %v2022_v26 = vld [vmem:[%s3119_s30 + $0x150] sm:$0xff] (%p2696_p10)  ;;  %v2024_v52 = vld [vmem:[%s3119_s30 + $0x158] sm:$0xff] (%p2696_p10) }
 0x1eb   : > { %1997 = vst [vmem:[%s3453_s7 + $0x1c8] sm:$0xff] (%p2696_p10), %v1996_v35  ;;  %1999 = vst [vmem:[%s3453_s7 + $0x1e0] sm:$0xff] (%p2696_p10), %v1998_v55  ;;  %v2026_v5 = vld [vmem:[%s3119_s30 + $0x160] sm:$0xff] (%p2696_p10)  ;;  %v2028_v53 = vld [vmem:[%s3119_s30 + $0x168] sm:$0xff] (%p2696_p10) }
 0x1ec   : > { %1912 = vst [vmem:[%s3119_s30 + $0x1f8] sm:$0xff] %v1848_v20  ;;  %2001 = vst [vmem:[%s3453_s7 + $0x1e8] sm:$0xff] (%p2696_p10), %v2000_v56  ;;  %v2030_v11 = vld [vmem:[%s3119_s30 + $0x170] sm:$0xff] (%p2696_p10)  ;;  %v2032_v6 = vld [vmem:[%s3119_s30 + $0x178] sm:$0xff] (%p2696_p10) }
 0x1ed   : > { %2003 = vst [vmem:[%s3453_s7 + $0x200] sm:$0xff] %v2002_v57  ;;  %2005 = vst [vmem:[%s3453_s7 + $0x208] sm:$0xff] %v2004_v61  ;;  %v2034_v7 = vld [vmem:[%s3119_s30 + $0x180] sm:$0xff]  ;;  %v2036_v8 = vld [vmem:[%s3119_s30 + $0x188] sm:$0xff] }
 0x1ee   : > { %2007 = vst [vmem:[%s3453_s7 + $0x220] sm:$0xff] %v2006_v58  ;;  %2009 = vst [vmem:[%s3453_s7 + $0x228] sm:$0xff] %v2008_v24  ;;  %v2038_v27 = vld [vmem:[%s3119_s30 + $0x190] sm:$0xff]  ;;  %v2040_v12 = vld [vmem:[%s3119_s30 + $0x198] sm:$0xff] }
 0x1ef   : > { %2011 = vst [vmem:[%s3453_s7 + $0x240] sm:$0xff] %v2010_v42  ;;  %2013 = vst [vmem:[%s3453_s7 + $0x248] sm:$0xff] %v2012_v62  ;;  %v2042_v18 = vld [vmem:[%s3119_s30 + $0x1a0] sm:$0xff]  ;;  %v2044_v60 = vld [vmem:[%s3119_s30 + $0x1a8] sm:$0xff] }
 0x1f0   : > { %2015 = vst [vmem:[%s3453_s7 + $0x260] sm:$0xff] %v2014_v63  ;;  %2017 = vst [vmem:[%s3453_s7 + $0x268] sm:$0xff] %v2016_v4  ;;  %v2046_v13 = vld [vmem:[%s3119_s30 + $0x1b0] sm:$0xff]  ;;  %v2048_v14 = vld [vmem:[%s3119_s30 + $0x1b8] sm:$0xff] }
 0x1f1   : > { %2019 = vst [vmem:[%s3453_s7 + $0x280] sm:$0xff] %v2018_v0  ;;  %2021 = vst [vmem:[%s3453_s7 + $0x288] sm:$0xff] %v2020_v1  ;;  %v2050_v15 = vld [vmem:[%s3119_s30 + $0x1c0] sm:$0xff]  ;;  %v2052_v29 = vld [vmem:[%s3119_s30 + $0x1c8] sm:$0xff] }
 0x1f2   : > { %2023 = vst [vmem:[%s3453_s7 + $0x2a0] sm:$0xff] %v2022_v26  ;;  %2025 = vst [vmem:[%s3453_s7 + $0x2a8] sm:$0xff] %v2024_v52  ;;  %v2054_v19 = vld [vmem:[%s3119_s30 + $0x1d0] sm:$0xff]  ;;  %v2056_v23 = vld [vmem:[%s3119_s30 + $0x1d8] sm:$0xff] }
 0x1f3   : > { %2027 = vst [vmem:[%s3453_s7 + $0x2c0] sm:$0xff] %v2026_v5  ;;  %2029 = vst [vmem:[%s3453_s7 + $0x2c8] sm:$0xff] %v2028_v53  ;;  %v2058_v2 = vld [vmem:[%s3119_s30 + $0x1e0] sm:$0xff]  ;;  %v2060_v3 = vld [vmem:[%s3119_s30 + $0x1e8] sm:$0xff] }
 0x1f4   : > { %2031 = vst [vmem:[%s3453_s7 + $0x2e0] sm:$0xff] %v2030_v11  ;;  %2033 = vst [vmem:[%s3453_s7 + $0x2e8] sm:$0xff] %v2032_v6  ;;  %v2062_v48 = vld [vmem:[%s3119_s30 + $0x1f0] sm:$0xff]  ;;  %v2064_v20 = vld [vmem:[%s3119_s30 + $0x1f8] sm:$0xff] }
 0x1f5   : > { %2035 = vst [vmem:[%s3453_s7 + $0x300] sm:$0xff] %v2034_v7  ;;  %2037 = vst [vmem:[%s3453_s7 + $0x308] sm:$0xff] %v2036_v8 }
 0x1f6   : > { %2039 = vst [vmem:[%s3453_s7 + $0x320] sm:$0xff] %v2038_v27  ;;  %2041 = vst [vmem:[%s3453_s7 + $0x328] sm:$0xff] %v2040_v12 }
 0x1f7   : > { %2043 = vst [vmem:[%s3453_s7 + $0x340] sm:$0xff] %v2042_v18  ;;  %2045 = vst [vmem:[%s3453_s7 + $0x348] sm:$0xff] %v2044_v60 }
 0x1f8   : > { %2047 = vst [vmem:[%s3453_s7 + $0x360] sm:$0xff] %v2046_v13  ;;  %2049 = vst [vmem:[%s3453_s7 + $0x368] sm:$0xff] %v2048_v14 }
 0x1f9   : > { %2051 = vst [vmem:[%s3453_s7 + $0x380] sm:$0xff] %v2050_v15  ;;  %2053 = vst [vmem:[%s3453_s7 + $0x388] sm:$0xff] %v2052_v29 }
 0x1fa   : > { %2055 = vst [vmem:[%s3453_s7 + $0x3a0] sm:$0xff] %v2054_v19  ;;  %2057 = vst [vmem:[%s3453_s7 + $0x3a8] sm:$0xff] %v2056_v23 }
 0x1fb   : > { %2059 = vst [vmem:[%s3453_s7 + $0x3c0] sm:$0xff] %v2058_v2  ;;  %2061 = vst [vmem:[%s3453_s7 + $0x3c8] sm:$0xff] %v2060_v3 }
 0x1fc   : > { %2063 = vst [vmem:[%s3453_s7 + $0x3e0] sm:$0xff] %v2062_v48  ;;  %2065 = vst [vmem:[%s3453_s7 + $0x3e8] sm:$0xff] %v2064_v20 }
 0x1fd PF: > { %s14_s23 = sadd.s32 1, %s2587_s23   ;;  %s3609_s15 = smov %s2559_s16 }
 0x1fe   : > { %p11_p3 = scmp.ge.s32.totalorder %s14_s23, 6   ;;  %s3610_s16 = smov %s2683_s5 }
 0x1ff   : > { %s3611_s17 = smov %s2567_s18  ;;  %s3612_s18 = smov %s2701_s10 }
 0x200   : > { %s3613_s19 = smov %s2579_s21  ;;  %s3614_s20 = smov %s2583_s22 }
 0x201   : > { %s3615_s21 = smov %s3618_s25  ;;  %s3616_s22 = smov %s3622_s26 }
 0x202   :  { %13 = sbr.rel (!%p11_p3) target bundleno = 5 (0x5), region = 169 }

</bundles_post_ra>
